<compile_context>
chip_gen: v7x
topology: tpu7x:2x2x1
jax: 0.10.0
libtpu: 0.0.40
codegen_flags: <defaults>
</compile_context>

<pallas_src>
import jax
import jax.numpy as jnp
from jax import lax
from jax.experimental import pallas as pl
from jax.experimental.pallas import tpu as pltpu

_LANE = 128


def _gate_recurrent_kernel(x_ref, b_ref, g1_ref, g2_ref, g3_ref, o_ref, c_ref):
    """One grid step: TW consecutive width columns of one N*C block.

    Blocks are (TW, H, NCB): H on sublanes, N*C on lanes (lane-dense stores).
    c_ref is an (H+2, NCB) f32 carry of the previous column, zero padded by
    one sublane row on each side so H[h-1,w-1] / H[h+1,w-1] are *static*
    sublane slices and the h==0 / h==H-1 / w==0 edge cases fall out for free.
    """
    # NOTE: the carry reset below relies on the W axis being the innermost
    # (sequential) grid dimension and N*C being the outer one.
    wb = pl.program_id(1)
    tw, hh, _ = x_ref.shape

    @pl.when(wb == 0)
    def _():
        # Fresh N*C block: the "previous column" is all zeros (incl. padding).
        c_ref[...] = jnp.zeros_like(c_ref)

    def column(t, h_md):
        # h_md == H[:, w-1] carried in registers (saves one VMEM load on the
        # serial path); c_ref is only needed for the +-1 sublane-shifted taps.
        x = x_ref[t].astype(jnp.float32)
        b = b_ref[t].astype(jnp.float32)
        g1 = g1_ref[t].astype(jnp.float32)
        g2 = g2_ref[t].astype(jnp.float32)
        g3 = g3_ref[t].astype(jnp.float32)

        h_up = c_ref[0:hh, :]          # H[h-1, w-1]  (pad row 0   -> 0 at h==0)
        h_dn = c_ref[2:hh + 2, :]      # H[h+1, w-1]  (pad row H+1 -> 0 at h==H-1)

        h_new = b * x + g1 * h_up + g2 * h_md + g3 * h_dn
        o_ref[t] = h_new.astype(o_ref.dtype)
        c_ref[1:hh + 1, :] = h_new     # f32 carry for the next column's taps
        return h_new

    # Carry from the previous width block (zeros at wb == 0).
    init = c_ref[1:hh + 1, :]
    # Partial unroll once tw gets large: the chain is serial anyway, full
    # unroll only inflates code size / vreg pressure.
    unroll = True if tw <= 32 else 8
    lax.fori_loop(0, tw, column, init, unroll=unroll)


def _round_up(x, m):
    return ((x + m - 1) // m) * m


def _device_params():
    """Returns (VMEM bytes per TensorCore, #TensorCores heuristic)."""
    try:
        vmem = int(getattr(pltpu.get_tpu_info(), "vmem_capacity_bytes"))
        if vmem <= 0:
            raise ValueError
        # 64 MiB parts (v7x-class) have 2 TensorCores per chip -> shard the
        # independent N*C axis; 128 MiB parts (v5e/v6e) are single-TC.
        num_tc = 2 if vmem <= 64 * 1024 * 1024 else 1
        return vmem, num_tc
    except Exception:
        # Conservative fallback that is safe on every generation.
        return 64 * 1024 * 1024, 1


def gate_recurrent_2d_noind_whc(X, B, G1, G2, G3, *, tw=None):
    """Kernel-native entry point: inputs/outputs already in (W, H, N*C) layout.

    Preferred when the caller can supply W-major data directly — it avoids the
    NCHW relayout HBM passes of `gate_recurrent_2d_noind` (the kernel itself is
    HBM-bandwidth bound).  bf16 inputs are supported: compute and the column
    carry stay f32; the output is cast back to the input dtype.
    """
    W, Hh, NC = X.shape
    itemsize = jnp.dtype(X.dtype).itemsize
    vmem_bytes, num_tc = _device_params()

    # ---- budgets (generation-aware): blocks are 5 inputs + 1 output, each
    # double-buffered, i.e. 12 * tw * Hh * ncb * itemsize bytes per grid step.
    tile_budget = (3 * vmem_bytes) // 8       # ~48 MiB on 128 MiB, ~24 on 64 MiB
    vmem_limit = (3 * vmem_bytes) // 4        # ~96 MiB on 128 MiB, ~48 on 64 MiB

    # ---- N*C blocking: lane-dense (multiple of 128); on multi-TC parts pad
    # so the block count is even and both cores get work.  Prefer the fewest /
    # widest blocks that still leave room for tw >= 8 columns in the budget.
    align = _LANE * num_tc
    NCp = _round_up(NC, align)
    per_lane_col = 12 * Hh * itemsize         # 6 arrays x 2 buffers, per lane
    ncb_cap = max(_LANE, ((tile_budget // (8 * per_lane_col)) // _LANE) * _LANE)
    d = NCp // _LANE
    ncb = _LANE
    for f in range(1, d + 1):
        if d % f:
            continue
        cand = _LANE * f
        if cand > ncb_cap:
            continue
        if num_tc > 1 and (NCp // cand) % num_tc:
            continue                          # keep an even block count per TC
        ncb = max(ncb, cand)
    n_nc = NCp // ncb

    # ---- width blocking: as many columns per grid step as the budget allows
    # (amortizes the ~0.35us/step grid overhead on the strictly serial W axis).
    if tw is None:
        per_col_block = 12 * Hh * ncb * itemsize
        tw = int(max(1, min(W, 256, tile_budget // max(1, per_col_block))))
    tw = int(max(1, min(int(tw), W)))
    n_w = int(pl.cdiv(W, tw))
    tw = -(-W // n_w)                          # rebalance -> minimal W padding
    Wp = n_w * tw

    # ---- zero-pad to the block grid.  Padded lanes / trailing columns have
    # zero inputs and gates, so they just compute zeros and are sliced off;
    # this keeps every output store lane-dense (unmasked vst) and avoids any
    # reliance on implicit partial-last-block handling.
    def padded(a):
        if Wp == W and NCp == NC:
            return a
        return jnp.pad(a, ((0, Wp - W), (0, 0), (0, NCp - NC)))

    xs = [padded(a) for a in (X, B, G1, G2, G3)]

    spec = pl.BlockSpec((tw, Hh, ncb), lambda nb, wb: (wb, 0, nb))

    out = pl.pallas_call(
        _gate_recurrent_kernel,
        out_shape=jax.ShapeDtypeStruct((Wp, Hh, NCp), X.dtype),
        grid_spec=pltpu.PrefetchScalarGridSpec(
            num_scalar_prefetch=0,
            grid=(n_nc, n_w),                  # W innermost => sequential carry
            in_specs=[spec] * 5,
            out_specs=spec,
            scratch_shapes=[pltpu.VMEM((Hh + 2, ncb), jnp.float32)],
        ),
        compiler_params=pltpu.CompilerParams(
            dimension_semantics=("parallel", "arbitrary"),
            vmem_limit_bytes=int(vmem_limit),
        ),
    )(*xs)

    if Wp != W or NCp != NC:
        out = out[:W, :, :NC]
    return out


def gate_recurrent_2d_noind(X, B, G1, G2, G3, *, tw=None):
    """NCHW interface matching the PyTorch module.

    The NCHW <-> (W, H, N*C) relayouts here are extra full-tensor HBM passes;
    if the op is called repeatedly, relayout once upstream and call
    `gate_recurrent_2d_noind_whc` directly with W-major data.
    """
    N, C, Hh, W = X.shape
    NC = N * C

    def to_whc(a):
        # NCHW -> (W, H, N*C): width-major, H on sublanes, N*C on lanes.
        return jnp.transpose(a, (3, 2, 0, 1)).reshape(W, Hh, NC)

    out = gate_recurrent_2d_noind_whc(
        *(to_whc(a) for a in (X, B, G1, G2, G3)), tw=tw)
    return jnp.transpose(out.reshape(W, Hh, N, C), (2, 3, 1, 0))


class GateRecurrent2dnoind:
    """Drop-in functional equivalent of the PyTorch module's forward."""

    def __init__(self, items_each_chunk_, backend="pallas"):
        # Chunking hint of the original CUDA backend; no effect on the math.
        self.items_each_chunk = items_each_chunk_
        self.backend = backend

    def __call__(self, X, B, G1, G2, G3):
        return gate_recurrent_2d_noind(X, B, G1, G2, G3)

    def __repr__(self):
        return f"{self.__class__.__name__}(backend={self.backend})"


def gate_recurrent_2d_noind_ref(X, B, G1, G2, G3):
    """Pure-JAX reference (scan over width) for verification."""
    def move(a):
        return jnp.transpose(a, (3, 0, 1, 2))  # (W, N, C, H)

    xs = tuple(move(a) for a in (X, B, G1, G2, G3))

    def step(h_prev, inputs):
        x, b, g1, g2, g3 = inputs              # each (N, C, H)
        h_up = jnp.pad(h_prev[..., :-1], ((0, 0), (0, 0), (1, 0)))
        h_dn = jnp.pad(h_prev[..., 1:], ((0, 0), (0, 0), (0, 1)))
        h_new = b * x + g1 * h_up + g2 * h_prev + g3 * h_dn
        return h_new, h_new

    init = jnp.zeros(xs[0].shape[1:], X.dtype)
    _, hs = lax.scan(step, init, xs)
    return jnp.transpose(hs, (1, 2, 3, 0))


if __name__ == "__main__":
    key = jax.random.PRNGKey(0)
    N, C, Hh, W = 2, 4, 16, 16
    k = jax.random.split(key, 5)
    X = jax.random.normal(k[0], (N, C, Hh, W), dtype=jnp.float32)
    B = jax.random.normal(k[1], (N, C, Hh, W), dtype=jnp.float32)
    # Gates in (0,1), like a typical sigmoid-gated recurrence.
    G1 = jax.nn.sigmoid(jax.random.normal(k[2], (N, C, Hh, W), dtype=jnp.float32))
    G2 = jax.nn.sigmoid(jax.random.normal(k[3], (N, C, Hh, W), dtype=jnp.float32))
    G3 = jax.nn.sigmoid(jax.random.normal(k[4], (N, C, Hh, W), dtype=jnp.float32))

    ref = gate_recurrent_2d_noind_ref(X, B, G1, G2, G3)

    # 1) Auto-selected tiling (single width block at these tiny shapes).
    mod = GateRecurrent2dnoind(items_each_chunk_=4)
    out_auto = jax.block_until_ready(mod(X, B, G1, G2, G3))
    assert out_auto.shape == (N, C, Hh, W)
    assert jnp.allclose(out_auto, ref, atol=1e-4, rtol=1e-5), float(
        jnp.max(jnp.abs(out_auto - ref)))

    # 2) tw=4 forces several sequential width blocks so the cross-block carry
    #    path is exercised; production shapes auto-pick much larger tw.
    out_blk = jax.block_until_ready(
        gate_recurrent_2d_noind(X, B, G1, G2, G3, tw=4))
    assert jnp.allclose(out_blk, ref, atol=1e-4, rtol=1e-5), float(
        jnp.max(jnp.abs(out_blk - ref)))

    print("KERNEL_OK")
</pallas_src>

<mosaic_0001>
module attributes {stable_mosaic.version = 11 : i64} {
  func.func @_gate_recurrent_kernel(%arg0: i32, %arg1: i32, %arg2: memref<16x16x128xf32, #tpu.memory_space<vmem>>, %arg3: memref<16x16x128xf32, #tpu.memory_space<vmem>>, %arg4: memref<16x16x128xf32, #tpu.memory_space<vmem>>, %arg5: memref<16x16x128xf32, #tpu.memory_space<vmem>>, %arg6: memref<16x16x128xf32, #tpu.memory_space<vmem>>, %arg7: memref<16x16x128xf32, #tpu.memory_space<vmem>>, %arg8: memref<18x128xf32, #tpu.memory_space<vmem>>) attributes {dimension_semantics = [#tpu.dimension_semantics<parallel>, #tpu.dimension_semantics<arbitrary>], iteration_bounds = array<i64: 1, 1>, scalar_prefetch = 0 : i64, scratch_operands = 1 : i64, tpu.core_type = #tpu.core_type<tc>, window_params = [{transform_indices = @transform_0, window_bounds = array<i64: 16, 16, 128>}, {transform_indices = @transform_1, window_bounds = array<i64: 16, 16, 128>}, {transform_indices = @transform_2, window_bounds = array<i64: 16, 16, 128>}, {transform_indices = @transform_3, window_bounds = array<i64: 16, 16, 128>}, {transform_indices = @transform_4, window_bounds = array<i64: 16, 16, 128>}, {transform_indices = @transform_5, window_bounds = array<i64: 16, 16, 128>}]} {
    %c0_i32 = arith.constant 0 : i32
    %0 = arith.cmpi eq, %arg1, %c0_i32 : i32
    %1 = arith.extui %0 : i1 to i32
    %c0_i32_0 = arith.constant 0 : i32
    %2 = arith.cmpi ne, %1, %c0_i32_0 : i32
    scf.if %2 {
      %cst = arith.constant 0.000000e+00 : f32
      %468 = vector.broadcast %cst : f32 to vector<18x128xf32>
      %c0_289 = arith.constant 0 : index
      %c0_290 = arith.constant 0 : index
      %469 = vector.load %arg8[%c0_289, %c0_290] : memref<18x128xf32, #tpu.memory_space<vmem>>, vector<18x128xf32>
      tpu.vector_store %arg8[%c0_289, %c0_290], %468 {strides = array<i32>} : memref<18x128xf32, #tpu.memory_space<vmem>>, vector<18x128xf32>,
    } else {
    }
    %c1 = arith.constant 1 : index
    %c0 = arith.constant 0 : index
    %3 = vector.load %arg8[%c1, %c0] : memref<18x128xf32, #tpu.memory_space<vmem>>, vector<16x128xf32>
    %c0_i32_1 = arith.constant 0 : i32
    %4 = arith.index_cast %c0_i32_1 : i32 to index
    %c0_2 = arith.constant 0 : index
    %c0_3 = arith.constant 0 : index
    %5 = vector.load %arg2[%4, %c0_2, %c0_3] : memref<16x16x128xf32, #tpu.memory_space<vmem>>, vector<1x16x128xf32>
    %6 = vector.shape_cast %5 : vector<1x16x128xf32> to vector<16x128xf32>
    %7 = arith.index_cast %c0_i32_1 : i32 to index
    %c0_4 = arith.constant 0 : index
    %c0_5 = arith.constant 0 : index
    %8 = vector.load %arg3[%7, %c0_4, %c0_5] : memref<16x16x128xf32, #tpu.memory_space<vmem>>, vector<1x16x128xf32>
    %9 = vector.shape_cast %8 : vector<1x16x128xf32> to vector<16x128xf32>
    %10 = arith.index_cast %c0_i32_1 : i32 to index
    %c0_6 = arith.constant 0 : index
    %c0_7 = arith.constant 0 : index
    %11 = vector.load %arg4[%10, %c0_6, %c0_7] : memref<16x16x128xf32, #tpu.memory_space<vmem>>, vector<1x16x128xf32>
    %12 = vector.shape_cast %11 : vector<1x16x128xf32> to vector<16x128xf32>
    %13 = arith.index_cast %c0_i32_1 : i32 to index
    %c0_8 = arith.constant 0 : index
    %c0_9 = arith.constant 0 : index
    %14 = vector.load %arg5[%13, %c0_8, %c0_9] : memref<16x16x128xf32, #tpu.memory_space<vmem>>, vector<1x16x128xf32>
    %15 = vector.shape_cast %14 : vector<1x16x128xf32> to vector<16x128xf32>
    %16 = arith.index_cast %c0_i32_1 : i32 to index
    %c0_10 = arith.constant 0 : index
    %c0_11 = arith.constant 0 : index
    %17 = vector.load %arg6[%16, %c0_10, %c0_11] : memref<16x16x128xf32, #tpu.memory_space<vmem>>, vector<1x16x128xf32>
    %18 = vector.shape_cast %17 : vector<1x16x128xf32> to vector<16x128xf32>
    %c0_12 = arith.constant 0 : index
    %c0_13 = arith.constant 0 : index
    %19 = vector.load %arg8[%c0_12, %c0_13] : memref<18x128xf32, #tpu.memory_space<vmem>>, vector<16x128xf32>
    %c2 = arith.constant 2 : index
    %c0_14 = arith.constant 0 : index
    %20 = vector.load %arg8[%c2, %c0_14] : memref<18x128xf32, #tpu.memory_space<vmem>>, vector<16x128xf32>
    %21 = arith.mulf %9, %6 : vector<16x128xf32>
    %22 = arith.mulf %12, %19 : vector<16x128xf32>
    %23 = arith.addf %21, %22 : vector<16x128xf32>
    %24 = arith.mulf %15, %3 : vector<16x128xf32>
    %25 = arith.addf %23, %24 : vector<16x128xf32>
    %26 = arith.mulf %18, %20 : vector<16x128xf32>
    %27 = arith.addf %25, %26 : vector<16x128xf32>
    %28 = arith.index_cast %c0_i32_1 : i32 to index
    %c0_15 = arith.constant 0 : index
    %c0_16 = arith.constant 0 : index
    %29 = vector.load %arg7[%28, %c0_15, %c0_16] : memref<16x16x128xf32, #tpu.memory_space<vmem>>, vector<1x16x128xf32>
    %30 = vector.shape_cast %29 : vector<1x16x128xf32> to vector<16x128xf32>
    %31 = vector.shape_cast %27 : vector<16x128xf32> to vector<1x16x128xf32>
    tpu.vector_store %arg7[%28, %c0_15, %c0_16], %31 {strides = array<i32>} : memref<16x16x128xf32, #tpu.memory_space<vmem>>, vector<1x16x128xf32>,
    %c1_17 = arith.constant 1 : index
    %c0_18 = arith.constant 0 : index
    %32 = vector.load %arg8[%c1_17, %c0_18] : memref<18x128xf32, #tpu.memory_space<vmem>>, vector<16x128xf32>
    tpu.vector_store %arg8[%c1_17, %c0_18], %27 {strides = array<i32>} : memref<18x128xf32, #tpu.memory_space<vmem>>, vector<16x128xf32>,
    %c1_i32 = arith.constant 1 : i32
    %33 = arith.index_cast %c1_i32 : i32 to index
    %c0_19 = arith.constant 0 : index
    %c0_20 = arith.constant 0 : index
    %34 = vector.load %arg2[%33, %c0_19, %c0_20] : memref<16x16x128xf32, #tpu.memory_space<vmem>>, vector<1x16x128xf32>
    %35 = vector.shape_cast %34 : vector<1x16x128xf32> to vector<16x128xf32>
    %36 = arith.index_cast %c1_i32 : i32 to index
    %c0_21 = arith.constant 0 : index
    %c0_22 = arith.constant 0 : index
    %37 = vector.load %arg3[%36, %c0_21, %c0_22] : memref<16x16x128xf32, #tpu.memory_space<vmem>>, vector<1x16x128xf32>
    %38 = vector.shape_cast %37 : vector<1x16x128xf32> to vector<16x128xf32>
    %39 = arith.index_cast %c1_i32 : i32 to index
    %c0_23 = arith.constant 0 : index
    %c0_24 = arith.constant 0 : index
    %40 = vector.load %arg4[%39, %c0_23, %c0_24] : memref<16x16x128xf32, #tpu.memory_space<vmem>>, vector<1x16x128xf32>
    %41 = vector.shape_cast %40 : vector<1x16x128xf32> to vector<16x128xf32>
    %42 = arith.index_cast %c1_i32 : i32 to index
    %c0_25 = arith.constant 0 : index
    %c0_26 = arith.constant 0 : index
    %43 = vector.load %arg5[%42, %c0_25, %c0_26] : memref<16x16x128xf32, #tpu.memory_space<vmem>>, vector<1x16x128xf32>
    %44 = vector.shape_cast %43 : vector<1x16x128xf32> to vector<16x128xf32>
    %45 = arith.index_cast %c1_i32 : i32 to index
    %c0_27 = arith.constant 0 : index
    %c0_28 = arith.constant 0 : index
    %46 = vector.load %arg6[%45, %c0_27, %c0_28] : memref<16x16x128xf32, #tpu.memory_space<vmem>>, vector<1x16x128xf32>
    %47 = vector.shape_cast %46 : vector<1x16x128xf32> to vector<16x128xf32>
    %c0_29 = arith.constant 0 : index
    %c0_30 = arith.constant 0 : index
    %48 = vector.load %arg8[%c0_29, %c0_30] : memref<18x128xf32, #tpu.memory_space<vmem>>, vector<16x128xf32>
    %c2_31 = arith.constant 2 : index
    %c0_32 = arith.constant 0 : index
    %49 = vector.load %arg8[%c2_31, %c0_32] : memref<18x128xf32, #tpu.memory_space<vmem>>, vector<16x128xf32>
    %50 = arith.mulf %38, %35 : vector<16x128xf32>
    %51 = arith.mulf %41, %48 : vector<16x128xf32>
    %52 = arith.addf %50, %51 : vector<16x128xf32>
    %53 = arith.mulf %44, %27 : vector<16x128xf32>
    %54 = arith.addf %52, %53 : vector<16x128xf32>
    %55 = arith.mulf %47, %49 : vector<16x128xf32>
    %56 = arith.addf %54, %55 : vector<16x128xf32>
    %57 = arith.index_cast %c1_i32 : i32 to index
    %c0_33 = arith.constant 0 : index
    %c0_34 = arith.constant 0 : index
    %58 = vector.load %arg7[%57, %c0_33, %c0_34] : memref<16x16x128xf32, #tpu.memory_space<vmem>>, vector<1x16x128xf32>
    %59 = vector.shape_cast %58 : vector<1x16x128xf32> to vector<16x128xf32>
    %60 = vector.shape_cast %56 : vector<16x128xf32> to vector<1x16x128xf32>
    tpu.vector_store %arg7[%57, %c0_33, %c0_34], %60 {strides = array<i32>} : memref<16x16x128xf32, #tpu.memory_space<vmem>>, vector<1x16x128xf32>,
    %c1_35 = arith.constant 1 : index
    %c0_36 = arith.constant 0 : index
    %61 = vector.load %arg8[%c1_35, %c0_36] : memref<18x128xf32, #tpu.memory_space<vmem>>, vector<16x128xf32>
    tpu.vector_store %arg8[%c1_35, %c0_36], %56 {strides = array<i32>} : memref<18x128xf32, #tpu.memory_space<vmem>>, vector<16x128xf32>,
    %c2_i32 = arith.constant 2 : i32
    %62 = arith.index_cast %c2_i32 : i32 to index
    %c0_37 = arith.constant 0 : index
    %c0_38 = arith.constant 0 : index
    %63 = vector.load %arg2[%62, %c0_37, %c0_38] : memref<16x16x128xf32, #tpu.memory_space<vmem>>, vector<1x16x128xf32>
    %64 = vector.shape_cast %63 : vector<1x16x128xf32> to vector<16x128xf32>
    %65 = arith.index_cast %c2_i32 : i32 to index
    %c0_39 = arith.constant 0 : index
    %c0_40 = arith.constant 0 : index
    %66 = vector.load %arg3[%65, %c0_39, %c0_40] : memref<16x16x128xf32, #tpu.memory_space<vmem>>, vector<1x16x128xf32>
    %67 = vector.shape_cast %66 : vector<1x16x128xf32> to vector<16x128xf32>
    %68 = arith.index_cast %c2_i32 : i32 to index
    %c0_41 = arith.constant 0 : index
    %c0_42 = arith.constant 0 : index
    %69 = vector.load %arg4[%68, %c0_41, %c0_42] : memref<16x16x128xf32, #tpu.memory_space<vmem>>, vector<1x16x128xf32>
    %70 = vector.shape_cast %69 : vector<1x16x128xf32> to vector<16x128xf32>
    %71 = arith.index_cast %c2_i32 : i32 to index
    %c0_43 = arith.constant 0 : index
    %c0_44 = arith.constant 0 : index
    %72 = vector.load %arg5[%71, %c0_43, %c0_44] : memref<16x16x128xf32, #tpu.memory_space<vmem>>, vector<1x16x128xf32>
    %73 = vector.shape_cast %72 : vector<1x16x128xf32> to vector<16x128xf32>
    %74 = arith.index_cast %c2_i32 : i32 to index
    %c0_45 = arith.constant 0 : index
    %c0_46 = arith.constant 0 : index
    %75 = vector.load %arg6[%74, %c0_45, %c0_46] : memref<16x16x128xf32, #tpu.memory_space<vmem>>, vector<1x16x128xf32>
    %76 = vector.shape_cast %75 : vector<1x16x128xf32> to vector<16x128xf32>
    %c0_47 = arith.constant 0 : index
    %c0_48 = arith.constant 0 : index
    %77 = vector.load %arg8[%c0_47, %c0_48] : memref<18x128xf32, #tpu.memory_space<vmem>>, vector<16x128xf32>
    %c2_49 = arith.constant 2 : index
    %c0_50 = arith.constant 0 : index
    %78 = vector.load %arg8[%c2_49, %c0_50] : memref<18x128xf32, #tpu.memory_space<vmem>>, vector<16x128xf32>
    %79 = arith.mulf %67, %64 : vector<16x128xf32>
    %80 = arith.mulf %70, %77 : vector<16x128xf32>
    %81 = arith.addf %79, %80 : vector<16x128xf32>
    %82 = arith.mulf %73, %56 : vector<16x128xf32>
    %83 = arith.addf %81, %82 : vector<16x128xf32>
    %84 = arith.mulf %76, %78 : vector<16x128xf32>
    %85 = arith.addf %83, %84 : vector<16x128xf32>
    %86 = arith.index_cast %c2_i32 : i32 to index
    %c0_51 = arith.constant 0 : index
    %c0_52 = arith.constant 0 : index
    %87 = vector.load %arg7[%86, %c0_51, %c0_52] : memref<16x16x128xf32, #tpu.memory_space<vmem>>, vector<1x16x128xf32>
    %88 = vector.shape_cast %87 : vector<1x16x128xf32> to vector<16x128xf32>
    %89 = vector.shape_cast %85 : vector<16x128xf32> to vector<1x16x128xf32>
    tpu.vector_store %arg7[%86, %c0_51, %c0_52], %89 {strides = array<i32>} : memref<16x16x128xf32, #tpu.memory_space<vmem>>, vector<1x16x128xf32>,
    %c1_53 = arith.constant 1 : index
    %c0_54 = arith.constant 0 : index
    %90 = vector.load %arg8[%c1_53, %c0_54] : memref<18x128xf32, #tpu.memory_space<vmem>>, vector<16x128xf32>
    tpu.vector_store %arg8[%c1_53, %c0_54], %85 {strides = array<i32>} : memref<18x128xf32, #tpu.memory_space<vmem>>, vector<16x128xf32>,
    %c3_i32 = arith.constant 3 : i32
    %91 = arith.index_cast %c3_i32 : i32 to index
    %c0_55 = arith.constant 0 : index
    %c0_56 = arith.constant 0 : index
    %92 = vector.load %arg2[%91, %c0_55, %c0_56] : memref<16x16x128xf32, #tpu.memory_space<vmem>>, vector<1x16x128xf32>
    %93 = vector.shape_cast %92 : vector<1x16x128xf32> to vector<16x128xf32>
    %94 = arith.index_cast %c3_i32 : i32 to index
    %c0_57 = arith.constant 0 : index
    %c0_58 = arith.constant 0 : index
    %95 = vector.load %arg3[%94, %c0_57, %c0_58] : memref<16x16x128xf32, #tpu.memory_space<vmem>>, vector<1x16x128xf32>
    %96 = vector.shape_cast %95 : vector<1x16x128xf32> to vector<16x128xf32>
    %97 = arith.index_cast %c3_i32 : i32 to index
    %c0_59 = arith.constant 0 : index
    %c0_60 = arith.constant 0 : index
    %98 = vector.load %arg4[%97, %c0_59, %c0_60] : memref<16x16x128xf32, #tpu.memory_space<vmem>>, vector<1x16x128xf32>
    %99 = vector.shape_cast %98 : vector<1x16x128xf32> to vector<16x128xf32>
    %100 = arith.index_cast %c3_i32 : i32 to index
    %c0_61 = arith.constant 0 : index
    %c0_62 = arith.constant 0 : index
    %101 = vector.load %arg5[%100, %c0_61, %c0_62] : memref<16x16x128xf32, #tpu.memory_space<vmem>>, vector<1x16x128xf32>
    %102 = vector.shape_cast %101 : vector<1x16x128xf32> to vector<16x128xf32>
    %103 = arith.index_cast %c3_i32 : i32 to index
    %c0_63 = arith.constant 0 : index
    %c0_64 = arith.constant 0 : index
    %104 = vector.load %arg6[%103, %c0_63, %c0_64] : memref<16x16x128xf32, #tpu.memory_space<vmem>>, vector<1x16x128xf32>
    %105 = vector.shape_cast %104 : vector<1x16x128xf32> to vector<16x128xf32>
    %c0_65 = arith.constant 0 : index
    %c0_66 = arith.constant 0 : index
    %106 = vector.load %arg8[%c0_65, %c0_66] : memref<18x128xf32, #tpu.memory_space<vmem>>, vector<16x128xf32>
    %c2_67 = arith.constant 2 : index
    %c0_68 = arith.constant 0 : index
    %107 = vector.load %arg8[%c2_67, %c0_68] : memref<18x128xf32, #tpu.memory_space<vmem>>, vector<16x128xf32>
    %108 = arith.mulf %96, %93 : vector<16x128xf32>
    %109 = arith.mulf %99, %106 : vector<16x128xf32>
    %110 = arith.addf %108, %109 : vector<16x128xf32>
    %111 = arith.mulf %102, %85 : vector<16x128xf32>
    %112 = arith.addf %110, %111 : vector<16x128xf32>
    %113 = arith.mulf %105, %107 : vector<16x128xf32>
    %114 = arith.addf %112, %113 : vector<16x128xf32>
    %115 = arith.index_cast %c3_i32 : i32 to index
    %c0_69 = arith.constant 0 : index
    %c0_70 = arith.constant 0 : index
    %116 = vector.load %arg7[%115, %c0_69, %c0_70] : memref<16x16x128xf32, #tpu.memory_space<vmem>>, vector<1x16x128xf32>
    %117 = vector.shape_cast %116 : vector<1x16x128xf32> to vector<16x128xf32>
    %118 = vector.shape_cast %114 : vector<16x128xf32> to vector<1x16x128xf32>
    tpu.vector_store %arg7[%115, %c0_69, %c0_70], %118 {strides = array<i32>} : memref<16x16x128xf32, #tpu.memory_space<vmem>>, vector<1x16x128xf32>,
    %c1_71 = arith.constant 1 : index
    %c0_72 = arith.constant 0 : index
    %119 = vector.load %arg8[%c1_71, %c0_72] : memref<18x128xf32, #tpu.memory_space<vmem>>, vector<16x128xf32>
    tpu.vector_store %arg8[%c1_71, %c0_72], %114 {strides = array<i32>} : memref<18x128xf32, #tpu.memory_space<vmem>>, vector<16x128xf32>,
    %c4_i32 = arith.constant 4 : i32
    %120 = arith.index_cast %c4_i32 : i32 to index
    %c0_73 = arith.constant 0 : index
    %c0_74 = arith.constant 0 : index
    %121 = vector.load %arg2[%120, %c0_73, %c0_74] : memref<16x16x128xf32, #tpu.memory_space<vmem>>, vector<1x16x128xf32>
    %122 = vector.shape_cast %121 : vector<1x16x128xf32> to vector<16x128xf32>
    %123 = arith.index_cast %c4_i32 : i32 to index
    %c0_75 = arith.constant 0 : index
    %c0_76 = arith.constant 0 : index
    %124 = vector.load %arg3[%123, %c0_75, %c0_76] : memref<16x16x128xf32, #tpu.memory_space<vmem>>, vector<1x16x128xf32>
    %125 = vector.shape_cast %124 : vector<1x16x128xf32> to vector<16x128xf32>
    %126 = arith.index_cast %c4_i32 : i32 to index
    %c0_77 = arith.constant 0 : index
    %c0_78 = arith.constant 0 : index
    %127 = vector.load %arg4[%126, %c0_77, %c0_78] : memref<16x16x128xf32, #tpu.memory_space<vmem>>, vector<1x16x128xf32>
    %128 = vector.shape_cast %127 : vector<1x16x128xf32> to vector<16x128xf32>
    %129 = arith.index_cast %c4_i32 : i32 to index
    %c0_79 = arith.constant 0 : index
    %c0_80 = arith.constant 0 : index
    %130 = vector.load %arg5[%129, %c0_79, %c0_80] : memref<16x16x128xf32, #tpu.memory_space<vmem>>, vector<1x16x128xf32>
    %131 = vector.shape_cast %130 : vector<1x16x128xf32> to vector<16x128xf32>
    %132 = arith.index_cast %c4_i32 : i32 to index
    %c0_81 = arith.constant 0 : index
    %c0_82 = arith.constant 0 : index
    %133 = vector.load %arg6[%132, %c0_81, %c0_82] : memref<16x16x128xf32, #tpu.memory_space<vmem>>, vector<1x16x128xf32>
    %134 = vector.shape_cast %133 : vector<1x16x128xf32> to vector<16x128xf32>
    %c0_83 = arith.constant 0 : index
    %c0_84 = arith.constant 0 : index
    %135 = vector.load %arg8[%c0_83, %c0_84] : memref<18x128xf32, #tpu.memory_space<vmem>>, vector<16x128xf32>
    %c2_85 = arith.constant 2 : index
    %c0_86 = arith.constant 0 : index
    %136 = vector.load %arg8[%c2_85, %c0_86] : memref<18x128xf32, #tpu.memory_space<vmem>>, vector<16x128xf32>
    %137 = arith.mulf %125, %122 : vector<16x128xf32>
    %138 = arith.mulf %128, %135 : vector<16x128xf32>
    %139 = arith.addf %137, %138 : vector<16x128xf32>
    %140 = arith.mulf %131, %114 : vector<16x128xf32>
    %141 = arith.addf %139, %140 : vector<16x128xf32>
    %142 = arith.mulf %134, %136 : vector<16x128xf32>
    %143 = arith.addf %141, %142 : vector<16x128xf32>
    %144 = arith.index_cast %c4_i32 : i32 to index
    %c0_87 = arith.constant 0 : index
    %c0_88 = arith.constant 0 : index
    %145 = vector.load %arg7[%144, %c0_87, %c0_88] : memref<16x16x128xf32, #tpu.memory_space<vmem>>, vector<1x16x128xf32>
    %146 = vector.shape_cast %145 : vector<1x16x128xf32> to vector<16x128xf32>
    %147 = vector.shape_cast %143 : vector<16x128xf32> to vector<1x16x128xf32>
    tpu.vector_store %arg7[%144, %c0_87, %c0_88], %147 {strides = array<i32>} : memref<16x16x128xf32, #tpu.memory_space<vmem>>, vector<1x16x128xf32>,
    %c1_89 = arith.constant 1 : index
    %c0_90 = arith.constant 0 : index
    %148 = vector.load %arg8[%c1_89, %c0_90] : memref<18x128xf32, #tpu.memory_space<vmem>>, vector<16x128xf32>
    tpu.vector_store %arg8[%c1_89, %c0_90], %143 {strides = array<i32>} : memref<18x128xf32, #tpu.memory_space<vmem>>, vector<16x128xf32>,
    %c5_i32 = arith.constant 5 : i32
    %149 = arith.index_cast %c5_i32 : i32 to index
    %c0_91 = arith.constant 0 : index
    %c0_92 = arith.constant 0 : index
    %150 = vector.load %arg2[%149, %c0_91, %c0_92] : memref<16x16x128xf32, #tpu.memory_space<vmem>>, vector<1x16x128xf32>
    %151 = vector.shape_cast %150 : vector<1x16x128xf32> to vector<16x128xf32>
    %152 = arith.index_cast %c5_i32 : i32 to index
    %c0_93 = arith.constant 0 : index
    %c0_94 = arith.constant 0 : index
    %153 = vector.load %arg3[%152, %c0_93, %c0_94] : memref<16x16x128xf32, #tpu.memory_space<vmem>>, vector<1x16x128xf32>
    %154 = vector.shape_cast %153 : vector<1x16x128xf32> to vector<16x128xf32>
    %155 = arith.index_cast %c5_i32 : i32 to index
    %c0_95 = arith.constant 0 : index
    %c0_96 = arith.constant 0 : index
    %156 = vector.load %arg4[%155, %c0_95, %c0_96] : memref<16x16x128xf32, #tpu.memory_space<vmem>>, vector<1x16x128xf32>
    %157 = vector.shape_cast %156 : vector<1x16x128xf32> to vector<16x128xf32>
    %158 = arith.index_cast %c5_i32 : i32 to index
    %c0_97 = arith.constant 0 : index
    %c0_98 = arith.constant 0 : index
    %159 = vector.load %arg5[%158, %c0_97, %c0_98] : memref<16x16x128xf32, #tpu.memory_space<vmem>>, vector<1x16x128xf32>
    %160 = vector.shape_cast %159 : vector<1x16x128xf32> to vector<16x128xf32>
    %161 = arith.index_cast %c5_i32 : i32 to index
    %c0_99 = arith.constant 0 : index
    %c0_100 = arith.constant 0 : index
    %162 = vector.load %arg6[%161, %c0_99, %c0_100] : memref<16x16x128xf32, #tpu.memory_space<vmem>>, vector<1x16x128xf32>
    %163 = vector.shape_cast %162 : vector<1x16x128xf32> to vector<16x128xf32>
    %c0_101 = arith.constant 0 : index
    %c0_102 = arith.constant 0 : index
    %164 = vector.load %arg8[%c0_101, %c0_102] : memref<18x128xf32, #tpu.memory_space<vmem>>, vector<16x128xf32>
    %c2_103 = arith.constant 2 : index
    %c0_104 = arith.constant 0 : index
    %165 = vector.load %arg8[%c2_103, %c0_104] : memref<18x128xf32, #tpu.memory_space<vmem>>, vector<16x128xf32>
    %166 = arith.mulf %154, %151 : vector<16x128xf32>
    %167 = arith.mulf %157, %164 : vector<16x128xf32>
    %168 = arith.addf %166, %167 : vector<16x128xf32>
    %169 = arith.mulf %160, %143 : vector<16x128xf32>
    %170 = arith.addf %168, %169 : vector<16x128xf32>
    %171 = arith.mulf %163, %165 : vector<16x128xf32>
    %172 = arith.addf %170, %171 : vector<16x128xf32>
    %173 = arith.index_cast %c5_i32 : i32 to index
    %c0_105 = arith.constant 0 : index
    %c0_106 = arith.constant 0 : index
    %174 = vector.load %arg7[%173, %c0_105, %c0_106] : memref<16x16x128xf32, #tpu.memory_space<vmem>>, vector<1x16x128xf32>
    %175 = vector.shape_cast %174 : vector<1x16x128xf32> to vector<16x128xf32>
    %176 = vector.shape_cast %172 : vector<16x128xf32> to vector<1x16x128xf32>
    tpu.vector_store %arg7[%173, %c0_105, %c0_106], %176 {strides = array<i32>} : memref<16x16x128xf32, #tpu.memory_space<vmem>>, vector<1x16x128xf32>,
    %c1_107 = arith.constant 1 : index
    %c0_108 = arith.constant 0 : index
    %177 = vector.load %arg8[%c1_107, %c0_108] : memref<18x128xf32, #tpu.memory_space<vmem>>, vector<16x128xf32>
    tpu.vector_store %arg8[%c1_107, %c0_108], %172 {strides = array<i32>} : memref<18x128xf32, #tpu.memory_space<vmem>>, vector<16x128xf32>,
    %c6_i32 = arith.constant 6 : i32
    %178 = arith.index_cast %c6_i32 : i32 to index
    %c0_109 = arith.constant 0 : index
    %c0_110 = arith.constant 0 : index
    %179 = vector.load %arg2[%178, %c0_109, %c0_110] : memref<16x16x128xf32, #tpu.memory_space<vmem>>, vector<1x16x128xf32>
    %180 = vector.shape_cast %179 : vector<1x16x128xf32> to vector<16x128xf32>
    %181 = arith.index_cast %c6_i32 : i32 to index
    %c0_111 = arith.constant 0 : index
    %c0_112 = arith.constant 0 : index
    %182 = vector.load %arg3[%181, %c0_111, %c0_112] : memref<16x16x128xf32, #tpu.memory_space<vmem>>, vector<1x16x128xf32>
    %183 = vector.shape_cast %182 : vector<1x16x128xf32> to vector<16x128xf32>
    %184 = arith.index_cast %c6_i32 : i32 to index
    %c0_113 = arith.constant 0 : index
    %c0_114 = arith.constant 0 : index
    %185 = vector.load %arg4[%184, %c0_113, %c0_114] : memref<16x16x128xf32, #tpu.memory_space<vmem>>, vector<1x16x128xf32>
    %186 = vector.shape_cast %185 : vector<1x16x128xf32> to vector<16x128xf32>
    %187 = arith.index_cast %c6_i32 : i32 to index
    %c0_115 = arith.constant 0 : index
    %c0_116 = arith.constant 0 : index
    %188 = vector.load %arg5[%187, %c0_115, %c0_116] : memref<16x16x128xf32, #tpu.memory_space<vmem>>, vector<1x16x128xf32>
    %189 = vector.shape_cast %188 : vector<1x16x128xf32> to vector<16x128xf32>
    %190 = arith.index_cast %c6_i32 : i32 to index
    %c0_117 = arith.constant 0 : index
    %c0_118 = arith.constant 0 : index
    %191 = vector.load %arg6[%190, %c0_117, %c0_118] : memref<16x16x128xf32, #tpu.memory_space<vmem>>, vector<1x16x128xf32>
    %192 = vector.shape_cast %191 : vector<1x16x128xf32> to vector<16x128xf32>
    %c0_119 = arith.constant 0 : index
    %c0_120 = arith.constant 0 : index
    %193 = vector.load %arg8[%c0_119, %c0_120] : memref<18x128xf32, #tpu.memory_space<vmem>>, vector<16x128xf32>
    %c2_121 = arith.constant 2 : index
    %c0_122 = arith.constant 0 : index
    %194 = vector.load %arg8[%c2_121, %c0_122] : memref<18x128xf32, #tpu.memory_space<vmem>>, vector<16x128xf32>
    %195 = arith.mulf %183, %180 : vector<16x128xf32>
    %196 = arith.mulf %186, %193 : vector<16x128xf32>
    %197 = arith.addf %195, %196 : vector<16x128xf32>
    %198 = arith.mulf %189, %172 : vector<16x128xf32>
    %199 = arith.addf %197, %198 : vector<16x128xf32>
    %200 = arith.mulf %192, %194 : vector<16x128xf32>
    %201 = arith.addf %199, %200 : vector<16x128xf32>
    %202 = arith.index_cast %c6_i32 : i32 to index
    %c0_123 = arith.constant 0 : index
    %c0_124 = arith.constant 0 : index
    %203 = vector.load %arg7[%202, %c0_123, %c0_124] : memref<16x16x128xf32, #tpu.memory_space<vmem>>, vector<1x16x128xf32>
    %204 = vector.shape_cast %203 : vector<1x16x128xf32> to vector<16x128xf32>
    %205 = vector.shape_cast %201 : vector<16x128xf32> to vector<1x16x128xf32>
    tpu.vector_store %arg7[%202, %c0_123, %c0_124], %205 {strides = array<i32>} : memref<16x16x128xf32, #tpu.memory_space<vmem>>, vector<1x16x128xf32>,
    %c1_125 = arith.constant 1 : index
    %c0_126 = arith.constant 0 : index
    %206 = vector.load %arg8[%c1_125, %c0_126] : memref<18x128xf32, #tpu.memory_space<vmem>>, vector<16x128xf32>
    tpu.vector_store %arg8[%c1_125, %c0_126], %201 {strides = array<i32>} : memref<18x128xf32, #tpu.memory_space<vmem>>, vector<16x128xf32>,
    %c7_i32 = arith.constant 7 : i32
    %207 = arith.index_cast %c7_i32 : i32 to index
    %c0_127 = arith.constant 0 : index
    %c0_128 = arith.constant 0 : index
    %208 = vector.load %arg2[%207, %c0_127, %c0_128] : memref<16x16x128xf32, #tpu.memory_space<vmem>>, vector<1x16x128xf32>
    %209 = vector.shape_cast %208 : vector<1x16x128xf32> to vector<16x128xf32>
    %210 = arith.index_cast %c7_i32 : i32 to index
    %c0_129 = arith.constant 0 : index
    %c0_130 = arith.constant 0 : index
    %211 = vector.load %arg3[%210, %c0_129, %c0_130] : memref<16x16x128xf32, #tpu.memory_space<vmem>>, vector<1x16x128xf32>
    %212 = vector.shape_cast %211 : vector<1x16x128xf32> to vector<16x128xf32>
    %213 = arith.index_cast %c7_i32 : i32 to index
    %c0_131 = arith.constant 0 : index
    %c0_132 = arith.constant 0 : index
    %214 = vector.load %arg4[%213, %c0_131, %c0_132] : memref<16x16x128xf32, #tpu.memory_space<vmem>>, vector<1x16x128xf32>
    %215 = vector.shape_cast %214 : vector<1x16x128xf32> to vector<16x128xf32>
    %216 = arith.index_cast %c7_i32 : i32 to index
    %c0_133 = arith.constant 0 : index
    %c0_134 = arith.constant 0 : index
    %217 = vector.load %arg5[%216, %c0_133, %c0_134] : memref<16x16x128xf32, #tpu.memory_space<vmem>>, vector<1x16x128xf32>
    %218 = vector.shape_cast %217 : vector<1x16x128xf32> to vector<16x128xf32>
    %219 = arith.index_cast %c7_i32 : i32 to index
    %c0_135 = arith.constant 0 : index
    %c0_136 = arith.constant 0 : index
    %220 = vector.load %arg6[%219, %c0_135, %c0_136] : memref<16x16x128xf32, #tpu.memory_space<vmem>>, vector<1x16x128xf32>
    %221 = vector.shape_cast %220 : vector<1x16x128xf32> to vector<16x128xf32>
    %c0_137 = arith.constant 0 : index
    %c0_138 = arith.constant 0 : index
    %222 = vector.load %arg8[%c0_137, %c0_138] : memref<18x128xf32, #tpu.memory_space<vmem>>, vector<16x128xf32>
    %c2_139 = arith.constant 2 : index
    %c0_140 = arith.constant 0 : index
    %223 = vector.load %arg8[%c2_139, %c0_140] : memref<18x128xf32, #tpu.memory_space<vmem>>, vector<16x128xf32>
    %224 = arith.mulf %212, %209 : vector<16x128xf32>
    %225 = arith.mulf %215, %222 : vector<16x128xf32>
    %226 = arith.addf %224, %225 : vector<16x128xf32>
    %227 = arith.mulf %218, %201 : vector<16x128xf32>
    %228 = arith.addf %226, %227 : vector<16x128xf32>
    %229 = arith.mulf %221, %223 : vector<16x128xf32>
    %230 = arith.addf %228, %229 : vector<16x128xf32>
    %231 = arith.index_cast %c7_i32 : i32 to index
    %c0_141 = arith.constant 0 : index
    %c0_142 = arith.constant 0 : index
    %232 = vector.load %arg7[%231, %c0_141, %c0_142] : memref<16x16x128xf32, #tpu.memory_space<vmem>>, vector<1x16x128xf32>
    %233 = vector.shape_cast %232 : vector<1x16x128xf32> to vector<16x128xf32>
    %234 = vector.shape_cast %230 : vector<16x128xf32> to vector<1x16x128xf32>
    tpu.vector_store %arg7[%231, %c0_141, %c0_142], %234 {strides = array<i32>} : memref<16x16x128xf32, #tpu.memory_space<vmem>>, vector<1x16x128xf32>,
    %c1_143 = arith.constant 1 : index
    %c0_144 = arith.constant 0 : index
    %235 = vector.load %arg8[%c1_143, %c0_144] : memref<18x128xf32, #tpu.memory_space<vmem>>, vector<16x128xf32>
    tpu.vector_store %arg8[%c1_143, %c0_144], %230 {strides = array<i32>} : memref<18x128xf32, #tpu.memory_space<vmem>>, vector<16x128xf32>,
    %c8_i32 = arith.constant 8 : i32
    %236 = arith.index_cast %c8_i32 : i32 to index
    %c0_145 = arith.constant 0 : index
    %c0_146 = arith.constant 0 : index
    %237 = vector.load %arg2[%236, %c0_145, %c0_146] : memref<16x16x128xf32, #tpu.memory_space<vmem>>, vector<1x16x128xf32>
    %238 = vector.shape_cast %237 : vector<1x16x128xf32> to vector<16x128xf32>
    %239 = arith.index_cast %c8_i32 : i32 to index
    %c0_147 = arith.constant 0 : index
    %c0_148 = arith.constant 0 : index
    %240 = vector.load %arg3[%239, %c0_147, %c0_148] : memref<16x16x128xf32, #tpu.memory_space<vmem>>, vector<1x16x128xf32>
    %241 = vector.shape_cast %240 : vector<1x16x128xf32> to vector<16x128xf32>
    %242 = arith.index_cast %c8_i32 : i32 to index
    %c0_149 = arith.constant 0 : index
    %c0_150 = arith.constant 0 : index
    %243 = vector.load %arg4[%242, %c0_149, %c0_150] : memref<16x16x128xf32, #tpu.memory_space<vmem>>, vector<1x16x128xf32>
    %244 = vector.shape_cast %243 : vector<1x16x128xf32> to vector<16x128xf32>
    %245 = arith.index_cast %c8_i32 : i32 to index
    %c0_151 = arith.constant 0 : index
    %c0_152 = arith.constant 0 : index
    %246 = vector.load %arg5[%245, %c0_151, %c0_152] : memref<16x16x128xf32, #tpu.memory_space<vmem>>, vector<1x16x128xf32>
    %247 = vector.shape_cast %246 : vector<1x16x128xf32> to vector<16x128xf32>
    %248 = arith.index_cast %c8_i32 : i32 to index
    %c0_153 = arith.constant 0 : index
    %c0_154 = arith.constant 0 : index
    %249 = vector.load %arg6[%248, %c0_153, %c0_154] : memref<16x16x128xf32, #tpu.memory_space<vmem>>, vector<1x16x128xf32>
    %250 = vector.shape_cast %249 : vector<1x16x128xf32> to vector<16x128xf32>
    %c0_155 = arith.constant 0 : index
    %c0_156 = arith.constant 0 : index
    %251 = vector.load %arg8[%c0_155, %c0_156] : memref<18x128xf32, #tpu.memory_space<vmem>>, vector<16x128xf32>
    %c2_157 = arith.constant 2 : index
    %c0_158 = arith.constant 0 : index
    %252 = vector.load %arg8[%c2_157, %c0_158] : memref<18x128xf32, #tpu.memory_space<vmem>>, vector<16x128xf32>
    %253 = arith.mulf %241, %238 : vector<16x128xf32>
    %254 = arith.mulf %244, %251 : vector<16x128xf32>
    %255 = arith.addf %253, %254 : vector<16x128xf32>
    %256 = arith.mulf %247, %230 : vector<16x128xf32>
    %257 = arith.addf %255, %256 : vector<16x128xf32>
    %258 = arith.mulf %250, %252 : vector<16x128xf32>
    %259 = arith.addf %257, %258 : vector<16x128xf32>
    %260 = arith.index_cast %c8_i32 : i32 to index
    %c0_159 = arith.constant 0 : index
    %c0_160 = arith.constant 0 : index
    %261 = vector.load %arg7[%260, %c0_159, %c0_160] : memref<16x16x128xf32, #tpu.memory_space<vmem>>, vector<1x16x128xf32>
    %262 = vector.shape_cast %261 : vector<1x16x128xf32> to vector<16x128xf32>
    %263 = vector.shape_cast %259 : vector<16x128xf32> to vector<1x16x128xf32>
    tpu.vector_store %arg7[%260, %c0_159, %c0_160], %263 {strides = array<i32>} : memref<16x16x128xf32, #tpu.memory_space<vmem>>, vector<1x16x128xf32>,
    %c1_161 = arith.constant 1 : index
    %c0_162 = arith.constant 0 : index
    %264 = vector.load %arg8[%c1_161, %c0_162] : memref<18x128xf32, #tpu.memory_space<vmem>>, vector<16x128xf32>
    tpu.vector_store %arg8[%c1_161, %c0_162], %259 {strides = array<i32>} : memref<18x128xf32, #tpu.memory_space<vmem>>, vector<16x128xf32>,
    %c9_i32 = arith.constant 9 : i32
    %265 = arith.index_cast %c9_i32 : i32 to index
    %c0_163 = arith.constant 0 : index
    %c0_164 = arith.constant 0 : index
    %266 = vector.load %arg2[%265, %c0_163, %c0_164] : memref<16x16x128xf32, #tpu.memory_space<vmem>>, vector<1x16x128xf32>
    %267 = vector.shape_cast %266 : vector<1x16x128xf32> to vector<16x128xf32>
    %268 = arith.index_cast %c9_i32 : i32 to index
    %c0_165 = arith.constant 0 : index
    %c0_166 = arith.constant 0 : index
    %269 = vector.load %arg3[%268, %c0_165, %c0_166] : memref<16x16x128xf32, #tpu.memory_space<vmem>>, vector<1x16x128xf32>
    %270 = vector.shape_cast %269 : vector<1x16x128xf32> to vector<16x128xf32>
    %271 = arith.index_cast %c9_i32 : i32 to index
    %c0_167 = arith.constant 0 : index
    %c0_168 = arith.constant 0 : index
    %272 = vector.load %arg4[%271, %c0_167, %c0_168] : memref<16x16x128xf32, #tpu.memory_space<vmem>>, vector<1x16x128xf32>
    %273 = vector.shape_cast %272 : vector<1x16x128xf32> to vector<16x128xf32>
    %274 = arith.index_cast %c9_i32 : i32 to index
    %c0_169 = arith.constant 0 : index
    %c0_170 = arith.constant 0 : index
    %275 = vector.load %arg5[%274, %c0_169, %c0_170] : memref<16x16x128xf32, #tpu.memory_space<vmem>>, vector<1x16x128xf32>
    %276 = vector.shape_cast %275 : vector<1x16x128xf32> to vector<16x128xf32>
    %277 = arith.index_cast %c9_i32 : i32 to index
    %c0_171 = arith.constant 0 : index
    %c0_172 = arith.constant 0 : index
    %278 = vector.load %arg6[%277, %c0_171, %c0_172] : memref<16x16x128xf32, #tpu.memory_space<vmem>>, vector<1x16x128xf32>
    %279 = vector.shape_cast %278 : vector<1x16x128xf32> to vector<16x128xf32>
    %c0_173 = arith.constant 0 : index
    %c0_174 = arith.constant 0 : index
    %280 = vector.load %arg8[%c0_173, %c0_174] : memref<18x128xf32, #tpu.memory_space<vmem>>, vector<16x128xf32>
    %c2_175 = arith.constant 2 : index
    %c0_176 = arith.constant 0 : index
    %281 = vector.load %arg8[%c2_175, %c0_176] : memref<18x128xf32, #tpu.memory_space<vmem>>, vector<16x128xf32>
    %282 = arith.mulf %270, %267 : vector<16x128xf32>
    %283 = arith.mulf %273, %280 : vector<16x128xf32>
    %284 = arith.addf %282, %283 : vector<16x128xf32>
    %285 = arith.mulf %276, %259 : vector<16x128xf32>
    %286 = arith.addf %284, %285 : vector<16x128xf32>
    %287 = arith.mulf %279, %281 : vector<16x128xf32>
    %288 = arith.addf %286, %287 : vector<16x128xf32>
    %289 = arith.index_cast %c9_i32 : i32 to index
    %c0_177 = arith.constant 0 : index
    %c0_178 = arith.constant 0 : index
    %290 = vector.load %arg7[%289, %c0_177, %c0_178] : memref<16x16x128xf32, #tpu.memory_space<vmem>>, vector<1x16x128xf32>
    %291 = vector.shape_cast %290 : vector<1x16x128xf32> to vector<16x128xf32>
    %292 = vector.shape_cast %288 : vector<16x128xf32> to vector<1x16x128xf32>
    tpu.vector_store %arg7[%289, %c0_177, %c0_178], %292 {strides = array<i32>} : memref<16x16x128xf32, #tpu.memory_space<vmem>>, vector<1x16x128xf32>,
    %c1_179 = arith.constant 1 : index
    %c0_180 = arith.constant 0 : index
    %293 = vector.load %arg8[%c1_179, %c0_180] : memref<18x128xf32, #tpu.memory_space<vmem>>, vector<16x128xf32>
    tpu.vector_store %arg8[%c1_179, %c0_180], %288 {strides = array<i32>} : memref<18x128xf32, #tpu.memory_space<vmem>>, vector<16x128xf32>,
    %c10_i32 = arith.constant 10 : i32
    %294 = arith.index_cast %c10_i32 : i32 to index
    %c0_181 = arith.constant 0 : index
    %c0_182 = arith.constant 0 : index
    %295 = vector.load %arg2[%294, %c0_181, %c0_182] : memref<16x16x128xf32, #tpu.memory_space<vmem>>, vector<1x16x128xf32>
    %296 = vector.shape_cast %295 : vector<1x16x128xf32> to vector<16x128xf32>
    %297 = arith.index_cast %c10_i32 : i32 to index
    %c0_183 = arith.constant 0 : index
    %c0_184 = arith.constant 0 : index
    %298 = vector.load %arg3[%297, %c0_183, %c0_184] : memref<16x16x128xf32, #tpu.memory_space<vmem>>, vector<1x16x128xf32>
    %299 = vector.shape_cast %298 : vector<1x16x128xf32> to vector<16x128xf32>
    %300 = arith.index_cast %c10_i32 : i32 to index
    %c0_185 = arith.constant 0 : index
    %c0_186 = arith.constant 0 : index
    %301 = vector.load %arg4[%300, %c0_185, %c0_186] : memref<16x16x128xf32, #tpu.memory_space<vmem>>, vector<1x16x128xf32>
    %302 = vector.shape_cast %301 : vector<1x16x128xf32> to vector<16x128xf32>
    %303 = arith.index_cast %c10_i32 : i32 to index
    %c0_187 = arith.constant 0 : index
    %c0_188 = arith.constant 0 : index
    %304 = vector.load %arg5[%303, %c0_187, %c0_188] : memref<16x16x128xf32, #tpu.memory_space<vmem>>, vector<1x16x128xf32>
    %305 = vector.shape_cast %304 : vector<1x16x128xf32> to vector<16x128xf32>
    %306 = arith.index_cast %c10_i32 : i32 to index
    %c0_189 = arith.constant 0 : index
    %c0_190 = arith.constant 0 : index
    %307 = vector.load %arg6[%306, %c0_189, %c0_190] : memref<16x16x128xf32, #tpu.memory_space<vmem>>, vector<1x16x128xf32>
    %308 = vector.shape_cast %307 : vector<1x16x128xf32> to vector<16x128xf32>
    %c0_191 = arith.constant 0 : index
    %c0_192 = arith.constant 0 : index
    %309 = vector.load %arg8[%c0_191, %c0_192] : memref<18x128xf32, #tpu.memory_space<vmem>>, vector<16x128xf32>
    %c2_193 = arith.constant 2 : index
    %c0_194 = arith.constant 0 : index
    %310 = vector.load %arg8[%c2_193, %c0_194] : memref<18x128xf32, #tpu.memory_space<vmem>>, vector<16x128xf32>
    %311 = arith.mulf %299, %296 : vector<16x128xf32>
    %312 = arith.mulf %302, %309 : vector<16x128xf32>
    %313 = arith.addf %311, %312 : vector<16x128xf32>
    %314 = arith.mulf %305, %288 : vector<16x128xf32>
    %315 = arith.addf %313, %314 : vector<16x128xf32>
    %316 = arith.mulf %308, %310 : vector<16x128xf32>
    %317 = arith.addf %315, %316 : vector<16x128xf32>
    %318 = arith.index_cast %c10_i32 : i32 to index
    %c0_195 = arith.constant 0 : index
    %c0_196 = arith.constant 0 : index
    %319 = vector.load %arg7[%318, %c0_195, %c0_196] : memref<16x16x128xf32, #tpu.memory_space<vmem>>, vector<1x16x128xf32>
    %320 = vector.shape_cast %319 : vector<1x16x128xf32> to vector<16x128xf32>
    %321 = vector.shape_cast %317 : vector<16x128xf32> to vector<1x16x128xf32>
    tpu.vector_store %arg7[%318, %c0_195, %c0_196], %321 {strides = array<i32>} : memref<16x16x128xf32, #tpu.memory_space<vmem>>, vector<1x16x128xf32>,
    %c1_197 = arith.constant 1 : index
    %c0_198 = arith.constant 0 : index
    %322 = vector.load %arg8[%c1_197, %c0_198] : memref<18x128xf32, #tpu.memory_space<vmem>>, vector<16x128xf32>
    tpu.vector_store %arg8[%c1_197, %c0_198], %317 {strides = array<i32>} : memref<18x128xf32, #tpu.memory_space<vmem>>, vector<16x128xf32>,
    %c11_i32 = arith.constant 11 : i32
    %323 = arith.index_cast %c11_i32 : i32 to index
    %c0_199 = arith.constant 0 : index
    %c0_200 = arith.constant 0 : index
    %324 = vector.load %arg2[%323, %c0_199, %c0_200] : memref<16x16x128xf32, #tpu.memory_space<vmem>>, vector<1x16x128xf32>
    %325 = vector.shape_cast %324 : vector<1x16x128xf32> to vector<16x128xf32>
    %326 = arith.index_cast %c11_i32 : i32 to index
    %c0_201 = arith.constant 0 : index
    %c0_202 = arith.constant 0 : index
    %327 = vector.load %arg3[%326, %c0_201, %c0_202] : memref<16x16x128xf32, #tpu.memory_space<vmem>>, vector<1x16x128xf32>
    %328 = vector.shape_cast %327 : vector<1x16x128xf32> to vector<16x128xf32>
    %329 = arith.index_cast %c11_i32 : i32 to index
    %c0_203 = arith.constant 0 : index
    %c0_204 = arith.constant 0 : index
    %330 = vector.load %arg4[%329, %c0_203, %c0_204] : memref<16x16x128xf32, #tpu.memory_space<vmem>>, vector<1x16x128xf32>
    %331 = vector.shape_cast %330 : vector<1x16x128xf32> to vector<16x128xf32>
    %332 = arith.index_cast %c11_i32 : i32 to index
    %c0_205 = arith.constant 0 : index
    %c0_206 = arith.constant 0 : index
    %333 = vector.load %arg5[%332, %c0_205, %c0_206] : memref<16x16x128xf32, #tpu.memory_space<vmem>>, vector<1x16x128xf32>
    %334 = vector.shape_cast %333 : vector<1x16x128xf32> to vector<16x128xf32>
    %335 = arith.index_cast %c11_i32 : i32 to index
    %c0_207 = arith.constant 0 : index
    %c0_208 = arith.constant 0 : index
    %336 = vector.load %arg6[%335, %c0_207, %c0_208] : memref<16x16x128xf32, #tpu.memory_space<vmem>>, vector<1x16x128xf32>
    %337 = vector.shape_cast %336 : vector<1x16x128xf32> to vector<16x128xf32>
    %c0_209 = arith.constant 0 : index
    %c0_210 = arith.constant 0 : index
    %338 = vector.load %arg8[%c0_209, %c0_210] : memref<18x128xf32, #tpu.memory_space<vmem>>, vector<16x128xf32>
    %c2_211 = arith.constant 2 : index
    %c0_212 = arith.constant 0 : index
    %339 = vector.load %arg8[%c2_211, %c0_212] : memref<18x128xf32, #tpu.memory_space<vmem>>, vector<16x128xf32>
    %340 = arith.mulf %328, %325 : vector<16x128xf32>
    %341 = arith.mulf %331, %338 : vector<16x128xf32>
    %342 = arith.addf %340, %341 : vector<16x128xf32>
    %343 = arith.mulf %334, %317 : vector<16x128xf32>
    %344 = arith.addf %342, %343 : vector<16x128xf32>
    %345 = arith.mulf %337, %339 : vector<16x128xf32>
    %346 = arith.addf %344, %345 : vector<16x128xf32>
    %347 = arith.index_cast %c11_i32 : i32 to index
    %c0_213 = arith.constant 0 : index
    %c0_214 = arith.constant 0 : index
    %348 = vector.load %arg7[%347, %c0_213, %c0_214] : memref<16x16x128xf32, #tpu.memory_space<vmem>>, vector<1x16x128xf32>
    %349 = vector.shape_cast %348 : vector<1x16x128xf32> to vector<16x128xf32>
    %350 = vector.shape_cast %346 : vector<16x128xf32> to vector<1x16x128xf32>
    tpu.vector_store %arg7[%347, %c0_213, %c0_214], %350 {strides = array<i32>} : memref<16x16x128xf32, #tpu.memory_space<vmem>>, vector<1x16x128xf32>,
    %c1_215 = arith.constant 1 : index
    %c0_216 = arith.constant 0 : index
    %351 = vector.load %arg8[%c1_215, %c0_216] : memref<18x128xf32, #tpu.memory_space<vmem>>, vector<16x128xf32>
    tpu.vector_store %arg8[%c1_215, %c0_216], %346 {strides = array<i32>} : memref<18x128xf32, #tpu.memory_space<vmem>>, vector<16x128xf32>,
    %c12_i32 = arith.constant 12 : i32
    %352 = arith.index_cast %c12_i32 : i32 to index
    %c0_217 = arith.constant 0 : index
    %c0_218 = arith.constant 0 : index
    %353 = vector.load %arg2[%352, %c0_217, %c0_218] : memref<16x16x128xf32, #tpu.memory_space<vmem>>, vector<1x16x128xf32>
    %354 = vector.shape_cast %353 : vector<1x16x128xf32> to vector<16x128xf32>
    %355 = arith.index_cast %c12_i32 : i32 to index
    %c0_219 = arith.constant 0 : index
    %c0_220 = arith.constant 0 : index
    %356 = vector.load %arg3[%355, %c0_219, %c0_220] : memref<16x16x128xf32, #tpu.memory_space<vmem>>, vector<1x16x128xf32>
    %357 = vector.shape_cast %356 : vector<1x16x128xf32> to vector<16x128xf32>
    %358 = arith.index_cast %c12_i32 : i32 to index
    %c0_221 = arith.constant 0 : index
    %c0_222 = arith.constant 0 : index
    %359 = vector.load %arg4[%358, %c0_221, %c0_222] : memref<16x16x128xf32, #tpu.memory_space<vmem>>, vector<1x16x128xf32>
    %360 = vector.shape_cast %359 : vector<1x16x128xf32> to vector<16x128xf32>
    %361 = arith.index_cast %c12_i32 : i32 to index
    %c0_223 = arith.constant 0 : index
    %c0_224 = arith.constant 0 : index
    %362 = vector.load %arg5[%361, %c0_223, %c0_224] : memref<16x16x128xf32, #tpu.memory_space<vmem>>, vector<1x16x128xf32>
    %363 = vector.shape_cast %362 : vector<1x16x128xf32> to vector<16x128xf32>
    %364 = arith.index_cast %c12_i32 : i32 to index
    %c0_225 = arith.constant 0 : index
    %c0_226 = arith.constant 0 : index
    %365 = vector.load %arg6[%364, %c0_225, %c0_226] : memref<16x16x128xf32, #tpu.memory_space<vmem>>, vector<1x16x128xf32>
    %366 = vector.shape_cast %365 : vector<1x16x128xf32> to vector<16x128xf32>
    %c0_227 = arith.constant 0 : index
    %c0_228 = arith.constant 0 : index
    %367 = vector.load %arg8[%c0_227, %c0_228] : memref<18x128xf32, #tpu.memory_space<vmem>>, vector<16x128xf32>
    %c2_229 = arith.constant 2 : index
    %c0_230 = arith.constant 0 : index
    %368 = vector.load %arg8[%c2_229, %c0_230] : memref<18x128xf32, #tpu.memory_space<vmem>>, vector<16x128xf32>
    %369 = arith.mulf %357, %354 : vector<16x128xf32>
    %370 = arith.mulf %360, %367 : vector<16x128xf32>
    %371 = arith.addf %369, %370 : vector<16x128xf32>
    %372 = arith.mulf %363, %346 : vector<16x128xf32>
    %373 = arith.addf %371, %372 : vector<16x128xf32>
    %374 = arith.mulf %366, %368 : vector<16x128xf32>
    %375 = arith.addf %373, %374 : vector<16x128xf32>
    %376 = arith.index_cast %c12_i32 : i32 to index
    %c0_231 = arith.constant 0 : index
    %c0_232 = arith.constant 0 : index
    %377 = vector.load %arg7[%376, %c0_231, %c0_232] : memref<16x16x128xf32, #tpu.memory_space<vmem>>, vector<1x16x128xf32>
    %378 = vector.shape_cast %377 : vector<1x16x128xf32> to vector<16x128xf32>
    %379 = vector.shape_cast %375 : vector<16x128xf32> to vector<1x16x128xf32>
    tpu.vector_store %arg7[%376, %c0_231, %c0_232], %379 {strides = array<i32>} : memref<16x16x128xf32, #tpu.memory_space<vmem>>, vector<1x16x128xf32>,
    %c1_233 = arith.constant 1 : index
    %c0_234 = arith.constant 0 : index
    %380 = vector.load %arg8[%c1_233, %c0_234] : memref<18x128xf32, #tpu.memory_space<vmem>>, vector<16x128xf32>
    tpu.vector_store %arg8[%c1_233, %c0_234], %375 {strides = array<i32>} : memref<18x128xf32, #tpu.memory_space<vmem>>, vector<16x128xf32>,
    %c13_i32 = arith.constant 13 : i32
    %381 = arith.index_cast %c13_i32 : i32 to index
    %c0_235 = arith.constant 0 : index
    %c0_236 = arith.constant 0 : index
    %382 = vector.load %arg2[%381, %c0_235, %c0_236] : memref<16x16x128xf32, #tpu.memory_space<vmem>>, vector<1x16x128xf32>
    %383 = vector.shape_cast %382 : vector<1x16x128xf32> to vector<16x128xf32>
    %384 = arith.index_cast %c13_i32 : i32 to index
    %c0_237 = arith.constant 0 : index
    %c0_238 = arith.constant 0 : index
    %385 = vector.load %arg3[%384, %c0_237, %c0_238] : memref<16x16x128xf32, #tpu.memory_space<vmem>>, vector<1x16x128xf32>
    %386 = vector.shape_cast %385 : vector<1x16x128xf32> to vector<16x128xf32>
    %387 = arith.index_cast %c13_i32 : i32 to index
    %c0_239 = arith.constant 0 : index
    %c0_240 = arith.constant 0 : index
    %388 = vector.load %arg4[%387, %c0_239, %c0_240] : memref<16x16x128xf32, #tpu.memory_space<vmem>>, vector<1x16x128xf32>
    %389 = vector.shape_cast %388 : vector<1x16x128xf32> to vector<16x128xf32>
    %390 = arith.index_cast %c13_i32 : i32 to index
    %c0_241 = arith.constant 0 : index
    %c0_242 = arith.constant 0 : index
    %391 = vector.load %arg5[%390, %c0_241, %c0_242] : memref<16x16x128xf32, #tpu.memory_space<vmem>>, vector<1x16x128xf32>
    %392 = vector.shape_cast %391 : vector<1x16x128xf32> to vector<16x128xf32>
    %393 = arith.index_cast %c13_i32 : i32 to index
    %c0_243 = arith.constant 0 : index
    %c0_244 = arith.constant 0 : index
    %394 = vector.load %arg6[%393, %c0_243, %c0_244] : memref<16x16x128xf32, #tpu.memory_space<vmem>>, vector<1x16x128xf32>
    %395 = vector.shape_cast %394 : vector<1x16x128xf32> to vector<16x128xf32>
    %c0_245 = arith.constant 0 : index
    %c0_246 = arith.constant 0 : index
    %396 = vector.load %arg8[%c0_245, %c0_246] : memref<18x128xf32, #tpu.memory_space<vmem>>, vector<16x128xf32>
    %c2_247 = arith.constant 2 : index
    %c0_248 = arith.constant 0 : index
    %397 = vector.load %arg8[%c2_247, %c0_248] : memref<18x128xf32, #tpu.memory_space<vmem>>, vector<16x128xf32>
    %398 = arith.mulf %386, %383 : vector<16x128xf32>
    %399 = arith.mulf %389, %396 : vector<16x128xf32>
    %400 = arith.addf %398, %399 : vector<16x128xf32>
    %401 = arith.mulf %392, %375 : vector<16x128xf32>
    %402 = arith.addf %400, %401 : vector<16x128xf32>
    %403 = arith.mulf %395, %397 : vector<16x128xf32>
    %404 = arith.addf %402, %403 : vector<16x128xf32>
    %405 = arith.index_cast %c13_i32 : i32 to index
    %c0_249 = arith.constant 0 : index
    %c0_250 = arith.constant 0 : index
    %406 = vector.load %arg7[%405, %c0_249, %c0_250] : memref<16x16x128xf32, #tpu.memory_space<vmem>>, vector<1x16x128xf32>
    %407 = vector.shape_cast %406 : vector<1x16x128xf32> to vector<16x128xf32>
    %408 = vector.shape_cast %404 : vector<16x128xf32> to vector<1x16x128xf32>
    tpu.vector_store %arg7[%405, %c0_249, %c0_250], %408 {strides = array<i32>} : memref<16x16x128xf32, #tpu.memory_space<vmem>>, vector<1x16x128xf32>,
    %c1_251 = arith.constant 1 : index
    %c0_252 = arith.constant 0 : index
    %409 = vector.load %arg8[%c1_251, %c0_252] : memref<18x128xf32, #tpu.memory_space<vmem>>, vector<16x128xf32>
    tpu.vector_store %arg8[%c1_251, %c0_252], %404 {strides = array<i32>} : memref<18x128xf32, #tpu.memory_space<vmem>>, vector<16x128xf32>,
    %c14_i32 = arith.constant 14 : i32
    %410 = arith.index_cast %c14_i32 : i32 to index
    %c0_253 = arith.constant 0 : index
    %c0_254 = arith.constant 0 : index
    %411 = vector.load %arg2[%410, %c0_253, %c0_254] : memref<16x16x128xf32, #tpu.memory_space<vmem>>, vector<1x16x128xf32>
    %412 = vector.shape_cast %411 : vector<1x16x128xf32> to vector<16x128xf32>
    %413 = arith.index_cast %c14_i32 : i32 to index
    %c0_255 = arith.constant 0 : index
    %c0_256 = arith.constant 0 : index
    %414 = vector.load %arg3[%413, %c0_255, %c0_256] : memref<16x16x128xf32, #tpu.memory_space<vmem>>, vector<1x16x128xf32>
    %415 = vector.shape_cast %414 : vector<1x16x128xf32> to vector<16x128xf32>
    %416 = arith.index_cast %c14_i32 : i32 to index
    %c0_257 = arith.constant 0 : index
    %c0_258 = arith.constant 0 : index
    %417 = vector.load %arg4[%416, %c0_257, %c0_258] : memref<16x16x128xf32, #tpu.memory_space<vmem>>, vector<1x16x128xf32>
    %418 = vector.shape_cast %417 : vector<1x16x128xf32> to vector<16x128xf32>
    %419 = arith.index_cast %c14_i32 : i32 to index
    %c0_259 = arith.constant 0 : index
    %c0_260 = arith.constant 0 : index
    %420 = vector.load %arg5[%419, %c0_259, %c0_260] : memref<16x16x128xf32, #tpu.memory_space<vmem>>, vector<1x16x128xf32>
    %421 = vector.shape_cast %420 : vector<1x16x128xf32> to vector<16x128xf32>
    %422 = arith.index_cast %c14_i32 : i32 to index
    %c0_261 = arith.constant 0 : index
    %c0_262 = arith.constant 0 : index
    %423 = vector.load %arg6[%422, %c0_261, %c0_262] : memref<16x16x128xf32, #tpu.memory_space<vmem>>, vector<1x16x128xf32>
    %424 = vector.shape_cast %423 : vector<1x16x128xf32> to vector<16x128xf32>
    %c0_263 = arith.constant 0 : index
    %c0_264 = arith.constant 0 : index
    %425 = vector.load %arg8[%c0_263, %c0_264] : memref<18x128xf32, #tpu.memory_space<vmem>>, vector<16x128xf32>
    %c2_265 = arith.constant 2 : index
    %c0_266 = arith.constant 0 : index
    %426 = vector.load %arg8[%c2_265, %c0_266] : memref<18x128xf32, #tpu.memory_space<vmem>>, vector<16x128xf32>
    %427 = arith.mulf %415, %412 : vector<16x128xf32>
    %428 = arith.mulf %418, %425 : vector<16x128xf32>
    %429 = arith.addf %427, %428 : vector<16x128xf32>
    %430 = arith.mulf %421, %404 : vector<16x128xf32>
    %431 = arith.addf %429, %430 : vector<16x128xf32>
    %432 = arith.mulf %424, %426 : vector<16x128xf32>
    %433 = arith.addf %431, %432 : vector<16x128xf32>
    %434 = arith.index_cast %c14_i32 : i32 to index
    %c0_267 = arith.constant 0 : index
    %c0_268 = arith.constant 0 : index
    %435 = vector.load %arg7[%434, %c0_267, %c0_268] : memref<16x16x128xf32, #tpu.memory_space<vmem>>, vector<1x16x128xf32>
    %436 = vector.shape_cast %435 : vector<1x16x128xf32> to vector<16x128xf32>
    %437 = vector.shape_cast %433 : vector<16x128xf32> to vector<1x16x128xf32>
    tpu.vector_store %arg7[%434, %c0_267, %c0_268], %437 {strides = array<i32>} : memref<16x16x128xf32, #tpu.memory_space<vmem>>, vector<1x16x128xf32>,
    %c1_269 = arith.constant 1 : index
    %c0_270 = arith.constant 0 : index
    %438 = vector.load %arg8[%c1_269, %c0_270] : memref<18x128xf32, #tpu.memory_space<vmem>>, vector<16x128xf32>
    tpu.vector_store %arg8[%c1_269, %c0_270], %433 {strides = array<i32>} : memref<18x128xf32, #tpu.memory_space<vmem>>, vector<16x128xf32>,
    %c15_i32 = arith.constant 15 : i32
    %439 = arith.index_cast %c15_i32 : i32 to index
    %c0_271 = arith.constant 0 : index
    %c0_272 = arith.constant 0 : index
    %440 = vector.load %arg2[%439, %c0_271, %c0_272] : memref<16x16x128xf32, #tpu.memory_space<vmem>>, vector<1x16x128xf32>
    %441 = vector.shape_cast %440 : vector<1x16x128xf32> to vector<16x128xf32>
    %442 = arith.index_cast %c15_i32 : i32 to index
    %c0_273 = arith.constant 0 : index
    %c0_274 = arith.constant 0 : index
    %443 = vector.load %arg3[%442, %c0_273, %c0_274] : memref<16x16x128xf32, #tpu.memory_space<vmem>>, vector<1x16x128xf32>
    %444 = vector.shape_cast %443 : vector<1x16x128xf32> to vector<16x128xf32>
    %445 = arith.index_cast %c15_i32 : i32 to index
    %c0_275 = arith.constant 0 : index
    %c0_276 = arith.constant 0 : index
    %446 = vector.load %arg4[%445, %c0_275, %c0_276] : memref<16x16x128xf32, #tpu.memory_space<vmem>>, vector<1x16x128xf32>
    %447 = vector.shape_cast %446 : vector<1x16x128xf32> to vector<16x128xf32>
    %448 = arith.index_cast %c15_i32 : i32 to index
    %c0_277 = arith.constant 0 : index
    %c0_278 = arith.constant 0 : index
    %449 = vector.load %arg5[%448, %c0_277, %c0_278] : memref<16x16x128xf32, #tpu.memory_space<vmem>>, vector<1x16x128xf32>
    %450 = vector.shape_cast %449 : vector<1x16x128xf32> to vector<16x128xf32>
    %451 = arith.index_cast %c15_i32 : i32 to index
    %c0_279 = arith.constant 0 : index
    %c0_280 = arith.constant 0 : index
    %452 = vector.load %arg6[%451, %c0_279, %c0_280] : memref<16x16x128xf32, #tpu.memory_space<vmem>>, vector<1x16x128xf32>
    %453 = vector.shape_cast %452 : vector<1x16x128xf32> to vector<16x128xf32>
    %c0_281 = arith.constant 0 : index
    %c0_282 = arith.constant 0 : index
    %454 = vector.load %arg8[%c0_281, %c0_282] : memref<18x128xf32, #tpu.memory_space<vmem>>, vector<16x128xf32>
    %c2_283 = arith.constant 2 : index
    %c0_284 = arith.constant 0 : index
    %455 = vector.load %arg8[%c2_283, %c0_284] : memref<18x128xf32, #tpu.memory_space<vmem>>, vector<16x128xf32>
    %456 = arith.mulf %444, %441 : vector<16x128xf32>
    %457 = arith.mulf %447, %454 : vector<16x128xf32>
    %458 = arith.addf %456, %457 : vector<16x128xf32>
    %459 = arith.mulf %450, %433 : vector<16x128xf32>
    %460 = arith.addf %458, %459 : vector<16x128xf32>
    %461 = arith.mulf %453, %455 : vector<16x128xf32>
    %462 = arith.addf %460, %461 : vector<16x128xf32>
    %463 = arith.index_cast %c15_i32 : i32 to index
    %c0_285 = arith.constant 0 : index
    %c0_286 = arith.constant 0 : index
    %464 = vector.load %arg7[%463, %c0_285, %c0_286] : memref<16x16x128xf32, #tpu.memory_space<vmem>>, vector<1x16x128xf32>
    %465 = vector.shape_cast %464 : vector<1x16x128xf32> to vector<16x128xf32>
    %466 = vector.shape_cast %462 : vector<16x128xf32> to vector<1x16x128xf32>
    tpu.vector_store %arg7[%463, %c0_285, %c0_286], %466 {strides = array<i32>} : memref<16x16x128xf32, #tpu.memory_space<vmem>>, vector<1x16x128xf32>,
    %c1_287 = arith.constant 1 : index
    %c0_288 = arith.constant 0 : index
    %467 = vector.load %arg8[%c1_287, %c0_288] : memref<18x128xf32, #tpu.memory_space<vmem>>, vector<16x128xf32>
    tpu.vector_store %arg8[%c1_287, %c0_288], %462 {strides = array<i32>} : memref<18x128xf32, #tpu.memory_space<vmem>>, vector<16x128xf32>,
    %c16_i32 = arith.constant 16 : i32
    return
  }
  func.func @transform_0(%arg0: i32, %arg1: i32) -> (i32, i32, i32) {
    %c0_i32 = arith.constant 0 : i32
    %c0_i32_0 = arith.constant 0 : i32
    return %arg1, %c0_i32, %arg0 : i32, i32, i32
  }
  func.func @transform_1(%arg0: i32, %arg1: i32) -> (i32, i32, i32) {
    %c0_i32 = arith.constant 0 : i32
    %c0_i32_0 = arith.constant 0 : i32
    return %arg1, %c0_i32, %arg0 : i32, i32, i32
  }
  func.func @transform_2(%arg0: i32, %arg1: i32) -> (i32, i32, i32) {
    %c0_i32 = arith.constant 0 : i32
    %c0_i32_0 = arith.constant 0 : i32
    return %arg1, %c0_i32, %arg0 : i32, i32, i32
  }
  func.func @transform_3(%arg0: i32, %arg1: i32) -> (i32, i32, i32) {
    %c0_i32 = arith.constant 0 : i32
    %c0_i32_0 = arith.constant 0 : i32
    return %arg1, %c0_i32, %arg0 : i32, i32, i32
  }
  func.func @transform_4(%arg0: i32, %arg1: i32) -> (i32, i32, i32) {
    %c0_i32 = arith.constant 0 : i32
    %c0_i32_0 = arith.constant 0 : i32
    return %arg1, %c0_i32, %arg0 : i32, i32, i32
  }
  func.func @transform_5(%arg0: i32, %arg1: i32) -> (i32, i32, i32) {
    %c0_i32 = arith.constant 0 : i32
    %c0_i32_0 = arith.constant 0 : i32
    return %arg1, %c0_i32, %arg0 : i32, i32, i32
  }
}

</mosaic_0001>

<bundles_post_ra>
// kernel: tpu_custom_call.1
= control target key start
LH: loop header
LB: loop body
LE: loop exit
PB: predicated region body
PF: predicated region fallthrough
CT: control target
= control target key end

     0   :  { %10 = vsyncpa [#allocation4], 0  ;;  %s1011_s0 = inlined_call_operand.hbm [shape: f32[16,16,128], index: 0, kind: input, shape index: {}]   ;;  %s1012_s1 = inlined_call_operand.hbm [shape: f32[16,16,128], index: 1, kind: input, shape index: {}]   ;;  %s1013_s2 = inlined_call_operand.hbm [shape: f32[16,16,128], index: 2, kind: input, shape index: {}]   ;;  %s1014_s3 = inlined_call_operand.hbm [shape: f32[16,16,128], index: 3, kind: input, shape index: {}]   ;;  %s1015_s4 = inlined_call_operand.hbm [shape: f32[16,16,128], index: 4, kind: input, shape index: {}]   ;;  %s1016_s5 = inlined_call_operand.hbm [shape: f32[16,16,128], index: 5, kind: output, shape index: {}]  }
   0x1   :  { %11 = vsyncpa [#allocation7], 0 }
   0x2   :  { %12 = vsyncpa [#allocation10], 0 }
   0x3   :  { %13 = vsyncpa [#allocation5], 0  ;;  %s868_s18 = smov [#allocation6]   ;;  %s869_s20 = smov [#allocation9]  }
   0x4   :  { %s31_s19 = sshll.u32 %s868_s18, 4  ;;  %s55_s21 = sshll.u32 %s869_s20, 4  ;;  %s32_s19 = int_to_ptr.vmem [resolvable:$true] %s31_s19  ;;  %s907_s21 = int_to_ptr.vmem [resolvable:$true] %s55_s21 }
   0x5   :  { %s728_s24 = scalar_lea.hbm %s1012_s1, 4096 }
   0x6   :  { %p729_p0 = scmp.ne.s32.totalorder %s1012_s1, %s728_s24  ;;  %p732_p1 = scmp.lt.u32.totalorder %s728_s24, %s1012_s1 }
   0x8   :  { %p734_p2 = pnand %p732_p1, %p729_p0 }
   0xa   :  { %737 = shalt.err (!%p734_p2)
}
   0xb   :  { %s738_s29 = scalar_lea.vmem %s32_s19, 4096  ;;  %p743_p4 = scmp.lt.s32.totalorder %s32_s19, %s32_s19 }
   0xc   :  { %p739_p3 = scmp.ne.s32.totalorder %s32_s19, %s738_s29  ;;  %p744_p5 = scmp.lt.s32.totalorder %s738_s29, %s738_s29 }
   0xe   :  { %p745_p6 = por %p744_p5, %p743_p4 }
  0x10   :  { %p746_p7 = pnand %p745_p6, %p739_p3 }
  0x12   :  { %749 = shalt.err (!%p746_p7)
}
  0x13   :  { %s870_s30 = smov 128   ;;  %s871_s6 = smov 8  }
  0x14   :  { %37 = dma.hbm_to_vmem [thread:$0]  %s1012_s1, 4096, %s32_s19, [#allocation7], %s870_s30, %s870_s30, %s871_s6  }
  0x15   :  { %s750_s11 = scalar_lea.hbm %s1014_s3, 4096 }
  0x16   :  { %p751_p8 = scmp.ne.s32.totalorder %s1014_s3, %s750_s11  ;;  %p754_p9 = scmp.lt.u32.totalorder %s750_s11, %s1014_s3 }
  0x18   :  { %p756_p10 = pnand %p754_p9, %p751_p8 }
  0x1a   :  { %759 = shalt.err (!%p756_p10)
}
  0x1b   :  { %s760_s16 = scalar_lea.vmem %s907_s21, 4096  ;;  %p765_p12 = scmp.lt.s32.totalorder %s907_s21, %s907_s21 }
  0x1c   :  { %p761_p11 = scmp.ne.s32.totalorder %s907_s21, %s760_s16  ;;  %p766_p13 = scmp.lt.s32.totalorder %s760_s16, %s760_s16 }
  0x1e   :  { %p767_p0 = por %p766_p13, %p765_p12 }
  0x20   :  { %p768_p1 = pnand %p767_p0, %p761_p11 }
  0x22   :  { %771 = shalt.err (!%p768_p1)
}
  0x23   :  { %61 = dma.hbm_to_vmem [thread:$0]  %s1014_s3, 4096, %s907_s21, [#allocation10], %s870_s30, %s870_s30, %s871_s6  }
  0x24   :  { %s872_s18 = smov [#allocation3]   ;;  %s873_s20 = smov [#allocation8]  }
  0x25   :  { %s19_s19 = sshll.u32 %s872_s18, 4  ;;  %s43_s22 = sshll.u32 %s873_s20, 4  ;;  %s20_s19 = int_to_ptr.vmem [resolvable:$true] %s19_s19  ;;  %s944_s22 = int_to_ptr.vmem [resolvable:$true] %s43_s22 }
  0x26   :  { %s772_s25 = scalar_lea.hbm %s1011_s0, 4096 }
  0x27   :  { %p773_p2 = scmp.ne.s32.totalorder %s1011_s0, %s772_s25  ;;  %p776_p3 = scmp.lt.u32.totalorder %s772_s25, %s1011_s0 }
  0x29   :  { %p778_p4 = pnand %p776_p3, %p773_p2 }
  0x2b   :  { %781 = shalt.err (!%p778_p4)
}
  0x2c   :  { %s782_s3 = scalar_lea.vmem %s20_s19, 4096  ;;  %p787_p6 = scmp.lt.s32.totalorder %s20_s19, %s20_s19 }
  0x2d   :  { %p783_p5 = scmp.ne.s32.totalorder %s20_s19, %s782_s3  ;;  %p788_p7 = scmp.lt.s32.totalorder %s782_s3, %s782_s3 }
  0x2f   :  { %p789_p8 = por %p788_p7, %p787_p6 }
  0x31   :  { %p790_p9 = pnand %p789_p8, %p783_p5 }
  0x33   :  { %793 = shalt.err (!%p790_p9)
}
  0x34   :  { %25 = dma.hbm_to_vmem [thread:$0]  %s1011_s0, 4096, %s20_s19, [#allocation4], %s870_s30, %s870_s30, %s871_s6  }
  0x35   :  { %s794_s10 = scalar_lea.hbm %s1013_s2, 4096 }
  0x36   :  { %p795_p10 = scmp.ne.s32.totalorder %s1013_s2, %s794_s10  ;;  %p798_p11 = scmp.lt.u32.totalorder %s794_s10, %s1013_s2 }
  0x38   :  { %p800_p12 = pnand %p798_p11, %p795_p10 }
  0x3a   :  { %803 = shalt.err (!%p800_p12)
}
  0x3b   :  { %s804_s15 = scalar_lea.vmem %s944_s22, 4096  ;;  %p809_p0 = scmp.lt.s32.totalorder %s944_s22, %s944_s22 }
  0x3c   :  { %p805_p13 = scmp.ne.s32.totalorder %s944_s22, %s804_s15  ;;  %p810_p1 = scmp.lt.s32.totalorder %s804_s15, %s804_s15 }
  0x3e   :  { %p811_p2 = por %p810_p1, %p809_p0 }
  0x40   :  { %p812_p3 = pnand %p811_p2, %p805_p13 }
  0x42   :  { %815 = shalt.err (!%p812_p3)
}
  0x43   :  { %49 = dma.hbm_to_vmem [thread:$0]  %s1013_s2, 4096, %s944_s22, [#allocation7], %s870_s30, %s870_s30, %s871_s6  }
  0x44   :  { %s874_s1 = smov [#allocation11]   ;;  %s816_s20 = scalar_lea.hbm %s1015_s4, 4096 }
  0x45   :  { %s67_s17 = sshll.u32 %s874_s1, 4  ;;  %p817_p4 = scmp.ne.s32.totalorder %s1015_s4, %s816_s20  ;;  %s68_s17 = int_to_ptr.vmem [resolvable:$true] %s67_s17 }
  0x46   :  { %p820_p5 = scmp.lt.u32.totalorder %s816_s20, %s1015_s4 }
  0x48   :  { %p822_p6 = pnand %p820_p5, %p817_p4 }
  0x4a   :  { %825 = shalt.err (!%p822_p6)
}
  0x4b   :  { %s826_s27 = scalar_lea.vmem %s68_s17, 4096  ;;  %p831_p8 = scmp.lt.s32.totalorder %s68_s17, %s68_s17 }
  0x4c   :  { %p827_p7 = scmp.ne.s32.totalorder %s68_s17, %s826_s27  ;;  %p832_p9 = scmp.lt.s32.totalorder %s826_s27, %s826_s27 }
  0x4e   :  { %p833_p10 = por %p832_p9, %p831_p8 }
  0x50   :  { %p834_p11 = pnand %p833_p10, %p827_p7 }
  0x52   :  { %837 = shalt.err (!%p834_p11)
}
  0x53   :  { %73 = dma.hbm_to_vmem [thread:$0]  %s1015_s4, 4096, %s68_s17, [#allocation10], %s870_s30, %s870_s30, %s871_s6  }
  0x54   :  { %860 = dma.done.wait [#allocation4], 4096  }
  0x55   :  { %861 = vsyncadd [#allocation4], 4294963200 }
  0x56   :  { %862 = dma.done.wait [#allocation7], 8192  }
  0x57   :  { %863 = vsyncadd [#allocation7], 4294959104 }
  0x58   :  { %864 = dma.done.wait [#allocation10], 8192  }
  0x59   :  { %865 = vsyncadd [#allocation10], 4294959104  ;;  %v875_v0 = vmov 0.0   ;;  %v98_v1 = vld [vmem:[#allocation3] sm:$0xff]  ;;  %v99_v13 = vld [vmem:[#allocation3 + $0x8] sm:$0xff]  ;;  %s876_s4 = smov [#allocation12]  }
  0x5a   :  { %93 = vst [vmem:[#allocation2] sm:$0xff] %v875_v0  ;;  %94 = vst [vmem:[#allocation2 + $0x8] sm:$0xff] %v875_v0  ;;  %v100_v2 = vld [vmem:[#allocation6] sm:$0xff]  ;;  %v101_v14 = vld [vmem:[#allocation6 + $0x8] sm:$0xff]  ;;  %s705_s28 = sshll.u32 %s876_s4, 4  ;;  %s706_s28 = int_to_ptr.vmem [resolvable:$true] %s705_s28 }
  0x5b   :  { %95 = vst [vmem:[#allocation2 + $0x10] sm:$0x3] %v875_v0  ;;  %v102_v3 = vld [vmem:[#allocation8] sm:$0xff]  ;;  %v112_v6 = vmul.f32 %v100_v2, %v98_v1  ;;  %v103_v15 = vld [vmem:[#allocation8 + $0x8] sm:$0xff]  ;;  %v113_v17 = vmul.f32 %v101_v14, %v99_v13  ;;  %v131_v29 = vld [vmem:[#allocation3 + $0x10] sm:$0xff]  ;;  %s838_s29 = scalar_lea.vmem %s706_s28, 4096  ;;  %p843_p13 = scmp.lt.s32.totalorder %s706_s28, %s706_s28 }
  0x5c   :  { %v114_v7 = vmul.f32 0.0, %v102_v3  ;;  %v104_v8 = vld [vmem:[#allocation9] sm:$0xff]  ;;  %v105_v16 = vld [vmem:[#allocation9 + $0x8] sm:$0xff]  ;;  %v115_v18 = vmul.f32 0.0, %v103_v15  ;;  %v134_v30 = vld [vmem:[#allocation6 + $0x10] sm:$0xff]  ;;  %p839_p12 = scmp.ne.s32.totalorder %s706_s28, %s838_s29  ;;  %p844_p0 = scmp.lt.s32.totalorder %s838_s29, %s838_s29 }
  0x5d   :  { %v106_v9 = vld [vmem:[#allocation11] sm:$0xff]  ;;  %v107_v22 = vld [vmem:[#allocation11 + $0x8] sm:$0xff]  ;;  %v137_v31 = vld [vmem:[#allocation8 + $0x10] sm:$0xff]  ;;  %v149_v32 = vmul.f32 %v134_v30, %v131_v29 }
  0x5e   :  { %v116_v11 = vadd.f32 %v114_v7, %v112_v6  ;;  %v117_v24 = vadd.f32 %v115_v18, %v113_v17  ;;  %v132_v33 = vld [vmem:[#allocation3 + $0x18] sm:$0xff]  ;;  %v140_v36 = vld [vmem:[#allocation9 + $0x10] sm:$0xff]  ;;  %v169_v57 = vld [vmem:[#allocation3 + $0x20] sm:$0xff]  ;;  %p845_p1 = por %p844_p0, %p843_p13 }
  0x5f   :  { %v135_v34 = vld [vmem:[#allocation6 + $0x18] sm:$0xff]  ;;  %v143_v39 = vld [vmem:[#allocation11 + $0x10] sm:$0xff]  ;;  %v172_v58 = vld [vmem:[#allocation6 + $0x20] sm:$0xff] }
  0x60   :  { %v138_v38 = vld [vmem:[#allocation8 + $0x18] sm:$0xff]  ;;  %v150_v40 = vmul.f32 %v135_v34, %v132_v33  ;;  %v175_v59 = vld [vmem:[#allocation8 + $0x20] sm:$0xff]  ;;  %v187_v60 = vmul.f32 %v172_v58, %v169_v57  ;;  %v170_v61 = vld [vmem:[#allocation3 + $0x28] sm:$0xff]  ;;  %p846_p2 = pnand %p845_p1, %p839_p12 }
  0x61   :  { %v110_v4 = vld [vmem:[#allocation2 + $0x2] sm:$0xff]  ;;  %v141_v45 = vld [vmem:[#allocation9 + $0x18] sm:$0xff]  ;;  %v178_v0 = vld [vmem:[#allocation9 + $0x20] sm:$0xff] }
  0x62   :  { %v96_v5 = vld [vmem:[#allocation2 + $0x1] sm:$0xff]  ;;  %v97_v10 = vld [vmem:[#allocation2 + $0x9] sm:$0xff]  ;;  %v122_v21 = vmul.f32 %v110_v4, %v106_v9  ;;  %v181_v3 = vld [vmem:[#allocation11 + $0x20] sm:$0xff] }
  0x63   :  { %v118_v12 = vmul.f32 %v104_v8, %v96_v5  ;;  %v111_v19 = vld [vmem:[#allocation2 + $0xa] sm:$0xff]  ;;  %v119_v23 = vmul.f32 %v105_v16, %v97_v10  ;;  %v173_v62 = vld [vmem:[#allocation6 + $0x28] sm:$0xff] }
  0x64   :  { %v123_v27 = vmul.f32 %v111_v19, %v107_v22  ;;  %v144_v50 = vld [vmem:[#allocation11 + $0x18] sm:$0xff]  ;;  %v176_v2 = vld [vmem:[#allocation8 + $0x28] sm:$0xff]  ;;  %v188_v4 = vmul.f32 %v173_v62, %v170_v61  ;;  %v210_v22 = vld [vmem:[#allocation6 + $0x30] sm:$0xff] }
  0x65   :  { %v120_v20 = vadd.f32 %v118_v12, %v116_v11  ;;  %v121_v26 = vadd.f32 %v119_v23, %v117_v24  ;;  %v179_v9 = vld [vmem:[#allocation9 + $0x28] sm:$0xff]  ;;  %v213_v23 = vld [vmem:[#allocation8 + $0x30] sm:$0xff]  ;;  %v214_v30 = vld [vmem:[#allocation8 + $0x38] sm:$0xff] }
  0x66   :  { %v182_v14 = vld [vmem:[#allocation11 + $0x28] sm:$0xff] }
  0x67   :  { %v124_v25 = vadd.f32 %v122_v21, %v120_v20  ;;  %v125_v28 = vadd.f32 %v123_v27, %v121_v26  ;;  %v207_v21 = vld [vmem:[#allocation3 + $0x30] sm:$0xff]  ;;  %v211_v26 = vld [vmem:[#allocation6 + $0x38] sm:$0xff]  ;;  %v252_v58 = vld [vmem:[#allocation8 + $0x48] sm:$0xff] }
  0x68   :  { %v225_v24 = vmul.f32 %v210_v22, %v207_v21  ;;  %v290_v22 = vld [vmem:[#allocation8 + $0x58] sm:$0xff] }
  0x69   :  { %126 = vst [vmem:[#allocation12] sm:$0xff] %v124_v25  ;;  %128 = vst [vmem:[#allocation2 + $0x1] sm:$0xff] %v124_v25  ;;  %v155_v44 = vmul.f32 %v140_v36, %v124_v25  ;;  %v156_v52 = vmul.f32 %v141_v45, %v125_v28  ;;  %v208_v25 = vld [vmem:[#allocation3 + $0x38] sm:$0xff] }
  0x6a   :  { %127 = vst [vmem:[#allocation12 + $0x8] sm:$0xff] %v125_v28  ;;  %129 = vst [vmem:[#allocation2 + $0x9] sm:$0xff] %v125_v28  ;;  %v216_v28 = vld [vmem:[#allocation9 + $0x30] sm:$0xff] }
  0x70   :  { %v145_v35 = vld [vmem:[#allocation2] sm:$0xff] }
  0x71   :  { %v151_v37 = vmul.f32 %v145_v35, %v137_v31  ;;  %v146_v41 = vld [vmem:[#allocation2 + $0x8] sm:$0xff] }
  0x72   :  { %v147_v42 = vld [vmem:[#allocation2 + $0x2] sm:$0xff]  ;;  %v152_v46 = vmul.f32 %v146_v41, %v138_v38  ;;  %v148_v47 = vld [vmem:[#allocation2 + $0xa] sm:$0xff] }
  0x73   :  { %v153_v43 = vadd.f32 %v151_v37, %v149_v32  ;;  %v159_v49 = vmul.f32 %v147_v42, %v143_v39  ;;  %v160_v55 = vmul.f32 %v148_v47, %v144_v50  ;;  %v219_v31 = vld [vmem:[#allocation11 + $0x30] sm:$0xff]  ;;  %v226_v32 = vmul.f32 %v211_v26, %v208_v25  ;;  %v217_v37 = vld [vmem:[#allocation9 + $0x38] sm:$0xff]  ;;  %v248_v50 = vld [vmem:[#allocation6 + $0x40] sm:$0xff] }
  0x74   :  { %v154_v51 = vadd.f32 %v152_v46, %v150_v40  ;;  %v220_v42 = vld [vmem:[#allocation11 + $0x38] sm:$0xff] }
  0x75   :  { %v157_v48 = vadd.f32 %v155_v44, %v153_v43 }
  0x76   :  { %v158_v54 = vadd.f32 %v156_v52, %v154_v51  ;;  %v251_v51 = vld [vmem:[#allocation8 + $0x40] sm:$0xff] }
  0x77   :  { %v161_v53 = vadd.f32 %v159_v49, %v157_v48  ;;  %v245_v49 = vld [vmem:[#allocation3 + $0x40] sm:$0xff] }
  0x78   :  { %v162_v56 = vadd.f32 %v160_v55, %v158_v54  ;;  %v263_v52 = vmul.f32 %v248_v50, %v245_v49  ;;  %v249_v54 = vld [vmem:[#allocation6 + $0x48] sm:$0xff] }
  0x79   :  { %164 = vst [vmem:[#allocation12 + $0x10] sm:$0xff] %v161_v53  ;;  %166 = vst [vmem:[#allocation2 + $0x1] sm:$0xff] %v161_v53  ;;  %v193_v8 = vmul.f32 %v178_v0, %v161_v53  ;;  %v246_v53 = vld [vmem:[#allocation3 + $0x48] sm:$0xff] }
  0x7a   :  { %165 = vst [vmem:[#allocation12 + $0x18] sm:$0xff] %v162_v56  ;;  %167 = vst [vmem:[#allocation2 + $0x9] sm:$0xff] %v162_v56  ;;  %v194_v16 = vmul.f32 %v179_v9, %v162_v56  ;;  %v254_v56 = vld [vmem:[#allocation9 + $0x40] sm:$0xff]  ;;  %v328_v50 = vld [vmem:[#allocation8 + $0x68] sm:$0xff] }
  0x80   :  { %v183_v63 = vld [vmem:[#allocation2] sm:$0xff] }
  0x81   :  { %v189_v1 = vmul.f32 %v183_v63, %v175_v59  ;;  %v184_v5 = vld [vmem:[#allocation2 + $0x8] sm:$0xff]  ;;  %v257_v59 = vld [vmem:[#allocation11 + $0x40] sm:$0xff] }
  0x82   :  { %v185_v6 = vld [vmem:[#allocation2 + $0x2] sm:$0xff]  ;;  %v190_v10 = vmul.f32 %v184_v5, %v176_v2  ;;  %v186_v11 = vld [vmem:[#allocation2 + $0xa] sm:$0xff] }
  0x83   :  { %v191_v7 = vadd.f32 %v189_v1, %v187_v60  ;;  %v197_v13 = vmul.f32 %v185_v6, %v181_v3  ;;  %v198_v19 = vmul.f32 %v186_v11, %v182_v14  ;;  %v264_v60 = vmul.f32 %v249_v54, %v246_v53  ;;  %v255_v1 = vld [vmem:[#allocation9 + $0x48] sm:$0xff]  ;;  %v286_v14 = vld [vmem:[#allocation6 + $0x50] sm:$0xff] }
  0x84   :  { %v192_v15 = vadd.f32 %v190_v10, %v188_v4  ;;  %v258_v6 = vld [vmem:[#allocation11 + $0x48] sm:$0xff] }
  0x85   :  { %v195_v12 = vadd.f32 %v193_v8, %v191_v7 }
  0x86   :  { %v196_v18 = vadd.f32 %v194_v16, %v192_v15  ;;  %v289_v15 = vld [vmem:[#allocation8 + $0x50] sm:$0xff] }
  0x87   :  { %v199_v17 = vadd.f32 %v197_v13, %v195_v12  ;;  %v283_v13 = vld [vmem:[#allocation3 + $0x50] sm:$0xff] }
  0x88   :  { %v200_v20 = vadd.f32 %v198_v19, %v196_v18  ;;  %v301_v16 = vmul.f32 %v286_v14, %v283_v13  ;;  %v287_v18 = vld [vmem:[#allocation6 + $0x58] sm:$0xff] }
  0x89   :  { %202 = vst [vmem:[#allocation12 + $0x20] sm:$0xff] %v199_v17  ;;  %204 = vst [vmem:[#allocation2 + $0x1] sm:$0xff] %v199_v17  ;;  %v231_v36 = vmul.f32 %v216_v28, %v199_v17  ;;  %v284_v17 = vld [vmem:[#allocation3 + $0x58] sm:$0xff] }
  0x8a   :  { %203 = vst [vmem:[#allocation12 + $0x28] sm:$0xff] %v200_v20  ;;  %205 = vst [vmem:[#allocation2 + $0x9] sm:$0xff] %v200_v20  ;;  %v232_v44 = vmul.f32 %v217_v37, %v200_v20  ;;  %v292_v20 = vld [vmem:[#allocation9 + $0x50] sm:$0xff]  ;;  %v366_v14 = vld [vmem:[#allocation8 + $0x78] sm:$0xff] }
  0x90   :  { %v221_v27 = vld [vmem:[#allocation2] sm:$0xff] }
  0x91   :  { %v227_v29 = vmul.f32 %v221_v27, %v213_v23  ;;  %v222_v33 = vld [vmem:[#allocation2 + $0x8] sm:$0xff] }
  0x92   :  { %v223_v34 = vld [vmem:[#allocation2 + $0x2] sm:$0xff]  ;;  %v228_v38 = vmul.f32 %v222_v33, %v214_v30  ;;  %v224_v39 = vld [vmem:[#allocation2 + $0xa] sm:$0xff] }
  0x93   :  { %v229_v35 = vadd.f32 %v227_v29, %v225_v24  ;;  %v235_v41 = vmul.f32 %v223_v34, %v219_v31  ;;  %v236_v47 = vmul.f32 %v224_v39, %v220_v42  ;;  %v295_v23 = vld [vmem:[#allocation11 + $0x50] sm:$0xff]  ;;  %v302_v24 = vmul.f32 %v287_v18, %v284_v17  ;;  %v293_v29 = vld [vmem:[#allocation9 + $0x58] sm:$0xff]  ;;  %v324_v42 = vld [vmem:[#allocation6 + $0x60] sm:$0xff] }
  0x94   :  { %v230_v43 = vadd.f32 %v228_v38, %v226_v32  ;;  %v296_v34 = vld [vmem:[#allocation11 + $0x58] sm:$0xff] }
  0x95   :  { %v233_v40 = vadd.f32 %v231_v36, %v229_v35 }
  0x96   :  { %v234_v46 = vadd.f32 %v232_v44, %v230_v43  ;;  %v327_v43 = vld [vmem:[#allocation8 + $0x60] sm:$0xff] }
  0x97   :  { %v237_v45 = vadd.f32 %v235_v41, %v233_v40  ;;  %v321_v41 = vld [vmem:[#allocation3 + $0x60] sm:$0xff] }
  0x98   :  { %v238_v48 = vadd.f32 %v236_v47, %v234_v46  ;;  %v339_v44 = vmul.f32 %v324_v42, %v321_v41  ;;  %v325_v46 = vld [vmem:[#allocation6 + $0x68] sm:$0xff] }
  0x99   :  { %240 = vst [vmem:[#allocation12 + $0x30] sm:$0xff] %v237_v45  ;;  %242 = vst [vmem:[#allocation2 + $0x1] sm:$0xff] %v237_v45  ;;  %v269_v0 = vmul.f32 %v254_v56, %v237_v45  ;;  %v322_v45 = vld [vmem:[#allocation3 + $0x68] sm:$0xff] }
  0x9a   :  { %241 = vst [vmem:[#allocation12 + $0x38] sm:$0xff] %v238_v48  ;;  %243 = vst [vmem:[#allocation2 + $0x9] sm:$0xff] %v238_v48  ;;  %v270_v8 = vmul.f32 %v255_v1, %v238_v48  ;;  %v330_v48 = vld [vmem:[#allocation9 + $0x60] sm:$0xff]  ;;  %v404_v42 = vld [vmem:[#allocation8 + $0x88] sm:$0xff] }
  0xa0   :  { %v259_v55 = vld [vmem:[#allocation2] sm:$0xff] }
  0xa1   :  { %v265_v57 = vmul.f32 %v259_v55, %v251_v51  ;;  %v260_v61 = vld [vmem:[#allocation2 + $0x8] sm:$0xff]  ;;  %v333_v51 = vld [vmem:[#allocation11 + $0x60] sm:$0xff] }
  0xa2   :  { %v261_v62 = vld [vmem:[#allocation2 + $0x2] sm:$0xff]  ;;  %v266_v2 = vmul.f32 %v260_v61, %v252_v58  ;;  %v262_v3 = vld [vmem:[#allocation2 + $0xa] sm:$0xff] }
  0xa3   :  { %v267_v63 = vadd.f32 %v265_v57, %v263_v52  ;;  %v273_v5 = vmul.f32 %v261_v62, %v257_v59  ;;  %v274_v11 = vmul.f32 %v262_v3, %v258_v6  ;;  %v340_v52 = vmul.f32 %v325_v46, %v322_v45  ;;  %v331_v57 = vld [vmem:[#allocation9 + $0x68] sm:$0xff]  ;;  %v362_v6 = vld [vmem:[#allocation6 + $0x70] sm:$0xff] }
  0xa4   :  { %v268_v7 = vadd.f32 %v266_v2, %v264_v60  ;;  %v334_v62 = vld [vmem:[#allocation11 + $0x68] sm:$0xff] }
  0xa5   :  { %v271_v4 = vadd.f32 %v269_v0, %v267_v63 }
  0xa6   :  { %v272_v10 = vadd.f32 %v270_v8, %v268_v7  ;;  %v365_v7 = vld [vmem:[#allocation8 + $0x70] sm:$0xff] }
  0xa7   :  { %v275_v9 = vadd.f32 %v273_v5, %v271_v4  ;;  %v359_v5 = vld [vmem:[#allocation3 + $0x70] sm:$0xff] }
  0xa8   :  { %v276_v12 = vadd.f32 %v274_v11, %v272_v10  ;;  %v377_v8 = vmul.f32 %v362_v6, %v359_v5  ;;  %v363_v10 = vld [vmem:[#allocation6 + $0x78] sm:$0xff] }
  0xa9   :  { %278 = vst [vmem:[#allocation12 + $0x40] sm:$0xff] %v275_v9  ;;  %280 = vst [vmem:[#allocation2 + $0x1] sm:$0xff] %v275_v9  ;;  %v307_v28 = vmul.f32 %v292_v20, %v275_v9  ;;  %v360_v9 = vld [vmem:[#allocation3 + $0x78] sm:$0xff] }
  0xaa   :  { %279 = vst [vmem:[#allocation12 + $0x48] sm:$0xff] %v276_v12  ;;  %281 = vst [vmem:[#allocation2 + $0x9] sm:$0xff] %v276_v12  ;;  %v308_v36 = vmul.f32 %v293_v29, %v276_v12  ;;  %v368_v12 = vld [vmem:[#allocation9 + $0x70] sm:$0xff]  ;;  %v442_v6 = vld [vmem:[#allocation8 + $0x98] sm:$0xff] }
  0xb0   :  { %v297_v19 = vld [vmem:[#allocation2] sm:$0xff] }
  0xb1   :  { %v303_v21 = vmul.f32 %v297_v19, %v289_v15  ;;  %v298_v25 = vld [vmem:[#allocation2 + $0x8] sm:$0xff] }
  0xb2   :  { %v299_v26 = vld [vmem:[#allocation2 + $0x2] sm:$0xff]  ;;  %v304_v30 = vmul.f32 %v298_v25, %v290_v22  ;;  %v300_v31 = vld [vmem:[#allocation2 + $0xa] sm:$0xff] }
  0xb3   :  { %v305_v27 = vadd.f32 %v303_v21, %v301_v16  ;;  %v311_v33 = vmul.f32 %v299_v26, %v295_v23  ;;  %v312_v39 = vmul.f32 %v300_v31, %v296_v34  ;;  %v371_v15 = vld [vmem:[#allocation11 + $0x70] sm:$0xff]  ;;  %v378_v16 = vmul.f32 %v363_v10, %v360_v9  ;;  %v369_v21 = vld [vmem:[#allocation9 + $0x78] sm:$0xff]  ;;  %v400_v34 = vld [vmem:[#allocation6 + $0x80] sm:$0xff] }
  0xb4   :  { %v306_v35 = vadd.f32 %v304_v30, %v302_v24  ;;  %v372_v25 = vld [vmem:[#allocation11 + $0x78] sm:$0xff] }
  0xb5   :  { %v309_v32 = vadd.f32 %v307_v28, %v305_v27 }
  0xb6   :  { %v310_v38 = vadd.f32 %v308_v36, %v306_v35  ;;  %v403_v35 = vld [vmem:[#allocation8 + $0x80] sm:$0xff] }
  0xb7   :  { %v313_v37 = vadd.f32 %v311_v33, %v309_v32  ;;  %v397_v33 = vld [vmem:[#allocation3 + $0x80] sm:$0xff] }
  0xb8   :  { %v314_v40 = vadd.f32 %v312_v39, %v310_v38  ;;  %v415_v36 = vmul.f32 %v400_v34, %v397_v33  ;;  %v401_v38 = vld [vmem:[#allocation6 + $0x88] sm:$0xff]  ;;  %v406_v39 = vld [vmem:[#allocation9 + $0x80] sm:$0xff] }
  0xb9   :  { %316 = vst [vmem:[#allocation12 + $0x50] sm:$0xff] %v313_v37  ;;  %318 = vst [vmem:[#allocation2 + $0x1] sm:$0xff] %v313_v37  ;;  %v345_v56 = vmul.f32 %v330_v48, %v313_v37  ;;  %v398_v37 = vld [vmem:[#allocation3 + $0x88] sm:$0xff] }
  0xba   :  { %317 = vst [vmem:[#allocation12 + $0x58] sm:$0xff] %v314_v40  ;;  %319 = vst [vmem:[#allocation2 + $0x9] sm:$0xff] %v314_v40  ;;  %v346_v0 = vmul.f32 %v331_v57, %v314_v40  ;;  %v480_v34 = vld [vmem:[#allocation8 + $0xa8] sm:$0xff] }
  0xc0   :  { %v335_v47 = vld [vmem:[#allocation2] sm:$0xff] }
  0xc1   :  { %v341_v49 = vmul.f32 %v335_v47, %v327_v43  ;;  %v336_v53 = vld [vmem:[#allocation2 + $0x8] sm:$0xff]  ;;  %v409_v43 = vld [vmem:[#allocation11 + $0x80] sm:$0xff] }
  0xc2   :  { %v337_v54 = vld [vmem:[#allocation2 + $0x2] sm:$0xff]  ;;  %v342_v58 = vmul.f32 %v336_v53, %v328_v50  ;;  %v338_v59 = vld [vmem:[#allocation2 + $0xa] sm:$0xff] }
  0xc3   :  { %v343_v55 = vadd.f32 %v341_v49, %v339_v44  ;;  %v349_v61 = vmul.f32 %v337_v54, %v333_v51  ;;  %v350_v3 = vmul.f32 %v338_v59, %v334_v62  ;;  %v416_v44 = vmul.f32 %v401_v38, %v398_v37  ;;  %v407_v49 = vld [vmem:[#allocation9 + $0x88] sm:$0xff]  ;;  %v438_v62 = vld [vmem:[#allocation6 + $0x90] sm:$0xff] }
  0xc4   :  { %v344_v63 = vadd.f32 %v342_v58, %v340_v52  ;;  %v410_v53 = vld [vmem:[#allocation11 + $0x88] sm:$0xff] }
  0xc5   :  { %v347_v60 = vadd.f32 %v345_v56, %v343_v55 }
  0xc6   :  { %v348_v2 = vadd.f32 %v346_v0, %v344_v63  ;;  %v441_v63 = vld [vmem:[#allocation8 + $0x90] sm:$0xff] }
  0xc7   :  { %v351_v1 = vadd.f32 %v349_v61, %v347_v60  ;;  %v435_v61 = vld [vmem:[#allocation3 + $0x90] sm:$0xff] }
  0xc8   :  { %v352_v4 = vadd.f32 %v350_v3, %v348_v2  ;;  %v453_v0 = vmul.f32 %v438_v62, %v435_v61  ;;  %v439_v2 = vld [vmem:[#allocation6 + $0x98] sm:$0xff]  ;;  %v444_v3 = vld [vmem:[#allocation9 + $0x90] sm:$0xff] }
  0xc9   :  { %354 = vst [vmem:[#allocation12 + $0x60] sm:$0xff] %v351_v1  ;;  %356 = vst [vmem:[#allocation2 + $0x1] sm:$0xff] %v351_v1  ;;  %v383_v20 = vmul.f32 %v368_v12, %v351_v1  ;;  %v436_v1 = vld [vmem:[#allocation3 + $0x98] sm:$0xff] }
  0xca   :  { %355 = vst [vmem:[#allocation12 + $0x68] sm:$0xff] %v352_v4  ;;  %357 = vst [vmem:[#allocation2 + $0x9] sm:$0xff] %v352_v4  ;;  %v384_v28 = vmul.f32 %v369_v21, %v352_v4  ;;  %v518_v62 = vld [vmem:[#allocation8 + $0xb8] sm:$0xff] }
  0xd0   :  { %v373_v11 = vld [vmem:[#allocation2] sm:$0xff] }
  0xd1   :  { %v379_v13 = vmul.f32 %v373_v11, %v365_v7  ;;  %v374_v17 = vld [vmem:[#allocation2 + $0x8] sm:$0xff] }
  0xd2   :  { %v375_v18 = vld [vmem:[#allocation2 + $0x2] sm:$0xff]  ;;  %v380_v22 = vmul.f32 %v374_v17, %v366_v14  ;;  %v376_v26 = vld [vmem:[#allocation2 + $0xa] sm:$0xff] }
  0xd3   :  { %v381_v19 = vadd.f32 %v379_v13, %v377_v8  ;;  %v387_v24 = vmul.f32 %v375_v18, %v371_v15  ;;  %v388_v31 = vmul.f32 %v376_v26, %v372_v25  ;;  %v447_v7 = vld [vmem:[#allocation11 + $0x90] sm:$0xff]  ;;  %v454_v8 = vmul.f32 %v439_v2, %v436_v1  ;;  %v445_v13 = vld [vmem:[#allocation9 + $0x98] sm:$0xff]  ;;  %v473_v25 = vld [vmem:[#allocation3 + $0xa0] sm:$0xff] }
  0xd4   :  { %v382_v27 = vadd.f32 %v380_v22, %v378_v16  ;;  %v448_v17 = vld [vmem:[#allocation11 + $0x98] sm:$0xff]  ;;  %v476_v26 = vld [vmem:[#allocation6 + $0xa0] sm:$0xff] }
  0xd5   :  { %v385_v23 = vadd.f32 %v383_v20, %v381_v19 }
  0xd6   :  { %v386_v30 = vadd.f32 %v384_v28, %v382_v27  ;;  %v479_v27 = vld [vmem:[#allocation8 + $0xa0] sm:$0xff]  ;;  %v491_v28 = vmul.f32 %v476_v26, %v473_v25  ;;  %v556_v26 = vld [vmem:[#allocation8 + $0xc8] sm:$0xff] }
  0xd7   :  { %v389_v29 = vadd.f32 %v387_v24, %v385_v23 }
  0xd8   :  { %v390_v32 = vadd.f32 %v388_v31, %v386_v30  ;;  %v477_v30 = vld [vmem:[#allocation6 + $0xa8] sm:$0xff]  ;;  %v482_v31 = vld [vmem:[#allocation9 + $0xa0] sm:$0xff] }
  0xd9   :  { %392 = vst [vmem:[#allocation12 + $0x70] sm:$0xff] %v389_v29  ;;  %394 = vst [vmem:[#allocation2 + $0x1] sm:$0xff] %v389_v29  ;;  %v421_v48 = vmul.f32 %v406_v39, %v389_v29  ;;  %v474_v29 = vld [vmem:[#allocation3 + $0xa8] sm:$0xff] }
  0xda   :  { %393 = vst [vmem:[#allocation12 + $0x78] sm:$0xff] %v390_v32  ;;  %395 = vst [vmem:[#allocation2 + $0x9] sm:$0xff] %v390_v32  ;;  %v422_v56 = vmul.f32 %v407_v49, %v390_v32 }
  0xe0   :  { %v411_v40 = vld [vmem:[#allocation2] sm:$0xff] }
  0xe1   :  { %v417_v41 = vmul.f32 %v411_v40, %v403_v35  ;;  %v412_v45 = vld [vmem:[#allocation2 + $0x8] sm:$0xff]  ;;  %v485_v35 = vld [vmem:[#allocation11 + $0xa0] sm:$0xff] }
  0xe2   :  { %v413_v46 = vld [vmem:[#allocation2 + $0x2] sm:$0xff]  ;;  %v418_v50 = vmul.f32 %v412_v45, %v404_v42  ;;  %v414_v54 = vld [vmem:[#allocation2 + $0xa] sm:$0xff] }
  0xe3   :  { %v419_v47 = vadd.f32 %v417_v41, %v415_v36  ;;  %v425_v52 = vmul.f32 %v413_v46, %v409_v43  ;;  %v426_v59 = vmul.f32 %v414_v54, %v410_v53  ;;  %v492_v36 = vmul.f32 %v477_v30, %v474_v29  ;;  %v483_v41 = vld [vmem:[#allocation9 + $0xa8] sm:$0xff]  ;;  %v511_v53 = vld [vmem:[#allocation3 + $0xb0] sm:$0xff] }
  0xe4   :  { %v420_v55 = vadd.f32 %v418_v50, %v416_v44  ;;  %v486_v45 = vld [vmem:[#allocation11 + $0xa8] sm:$0xff]  ;;  %v514_v54 = vld [vmem:[#allocation6 + $0xb0] sm:$0xff] }
  0xe5   :  { %v423_v51 = vadd.f32 %v421_v48, %v419_v47 }
  0xe6   :  { %v424_v58 = vadd.f32 %v422_v56, %v420_v55  ;;  %v517_v55 = vld [vmem:[#allocation8 + $0xb0] sm:$0xff]  ;;  %v529_v56 = vmul.f32 %v514_v54, %v511_v53  ;;  %v594_v54 = vld [vmem:[#allocation8 + $0xd8] sm:$0xff] }
  0xe7   :  { %v427_v57 = vadd.f32 %v425_v52, %v423_v51 }
  0xe8   :  { %v428_v60 = vadd.f32 %v426_v59, %v424_v58  ;;  %v515_v58 = vld [vmem:[#allocation6 + $0xb8] sm:$0xff]  ;;  %v520_v59 = vld [vmem:[#allocation9 + $0xb0] sm:$0xff] }
  0xe9   :  { %430 = vst [vmem:[#allocation12 + $0x80] sm:$0xff] %v427_v57  ;;  %432 = vst [vmem:[#allocation2 + $0x1] sm:$0xff] %v427_v57  ;;  %v459_v12 = vmul.f32 %v444_v3, %v427_v57  ;;  %v512_v57 = vld [vmem:[#allocation3 + $0xb8] sm:$0xff] }
  0xea   :  { %431 = vst [vmem:[#allocation12 + $0x88] sm:$0xff] %v428_v60  ;;  %433 = vst [vmem:[#allocation2 + $0x9] sm:$0xff] %v428_v60  ;;  %v460_v20 = vmul.f32 %v445_v13, %v428_v60 }
  0xf0   :  { %v449_v4 = vld [vmem:[#allocation2] sm:$0xff] }
  0xf1   :  { %v455_v5 = vmul.f32 %v449_v4, %v441_v63  ;;  %v450_v9 = vld [vmem:[#allocation2 + $0x8] sm:$0xff] }
  0xf2   :  { %v451_v10 = vld [vmem:[#allocation2 + $0x2] sm:$0xff]  ;;  %v456_v14 = vmul.f32 %v450_v9, %v442_v6  ;;  %v452_v18 = vld [vmem:[#allocation2 + $0xa] sm:$0xff] }
  0xf3   :  { %v457_v11 = vadd.f32 %v455_v5, %v453_v0  ;;  %v463_v16 = vmul.f32 %v451_v10, %v447_v7  ;;  %v464_v23 = vmul.f32 %v452_v18, %v448_v17  ;;  %v523_v63 = vld [vmem:[#allocation11 + $0xb0] sm:$0xff]  ;;  %v530_v0 = vmul.f32 %v515_v58, %v512_v57  ;;  %v521_v5 = vld [vmem:[#allocation9 + $0xb8] sm:$0xff]  ;;  %v549_v17 = vld [vmem:[#allocation3 + $0xc0] sm:$0xff] }
  0xf4   :  { %v458_v19 = vadd.f32 %v456_v14, %v454_v8  ;;  %v524_v9 = vld [vmem:[#allocation11 + $0xb8] sm:$0xff]  ;;  %v552_v18 = vld [vmem:[#allocation6 + $0xc0] sm:$0xff] }
  0xf5   :  { %v461_v15 = vadd.f32 %v459_v12, %v457_v11 }
  0xf6   :  { %v462_v22 = vadd.f32 %v460_v20, %v458_v19  ;;  %v555_v19 = vld [vmem:[#allocation8 + $0xc0] sm:$0xff]  ;;  %v567_v20 = vmul.f32 %v552_v18, %v549_v17  ;;  %v632_v18 = vld [vmem:[#allocation8 + $0xe8] sm:$0xff] }
  0xf7   :  { %v465_v21 = vadd.f32 %v463_v16, %v461_v15 }
  0xf8   :  { %v466_v24 = vadd.f32 %v464_v23, %v462_v22  ;;  %v553_v22 = vld [vmem:[#allocation6 + $0xc8] sm:$0xff]  ;;  %v558_v23 = vld [vmem:[#allocation9 + $0xc0] sm:$0xff] }
  0xf9   :  { %468 = vst [vmem:[#allocation12 + $0x90] sm:$0xff] %v465_v21  ;;  %470 = vst [vmem:[#allocation2 + $0x1] sm:$0xff] %v465_v21  ;;  %v497_v40 = vmul.f32 %v482_v31, %v465_v21  ;;  %v550_v21 = vld [vmem:[#allocation3 + $0xc8] sm:$0xff] }
  0xfa   :  { %469 = vst [vmem:[#allocation12 + $0x98] sm:$0xff] %v466_v24  ;;  %471 = vst [vmem:[#allocation2 + $0x9] sm:$0xff] %v466_v24  ;;  %v498_v48 = vmul.f32 %v483_v41, %v466_v24 }
 0x100   :  { %v487_v32 = vld [vmem:[#allocation2] sm:$0xff] }
 0x101   :  { %v493_v33 = vmul.f32 %v487_v32, %v479_v27  ;;  %v488_v37 = vld [vmem:[#allocation2 + $0x8] sm:$0xff]  ;;  %v561_v27 = vld [vmem:[#allocation11 + $0xc0] sm:$0xff]  ;;  %v559_v32 = vld [vmem:[#allocation9 + $0xc8] sm:$0xff] }
 0x102   :  { %v489_v38 = vld [vmem:[#allocation2 + $0x2] sm:$0xff]  ;;  %v494_v42 = vmul.f32 %v488_v37, %v480_v34  ;;  %v490_v46 = vld [vmem:[#allocation2 + $0xa] sm:$0xff] }
 0x103   :  { %v495_v39 = vadd.f32 %v493_v33, %v491_v28  ;;  %v501_v44 = vmul.f32 %v489_v38, %v485_v35  ;;  %v502_v51 = vmul.f32 %v490_v46, %v486_v45  ;;  %v568_v28 = vmul.f32 %v553_v22, %v550_v21  ;;  %v562_v37 = vld [vmem:[#allocation11 + $0xc8] sm:$0xff]  ;;  %v587_v45 = vld [vmem:[#allocation3 + $0xd0] sm:$0xff] }
 0x104   :  { %v496_v47 = vadd.f32 %v494_v42, %v492_v36  ;;  %v590_v46 = vld [vmem:[#allocation6 + $0xd0] sm:$0xff] }
 0x105   :  { %v499_v43 = vadd.f32 %v497_v40, %v495_v39 }
 0x106   :  { %v500_v50 = vadd.f32 %v498_v48, %v496_v47  ;;  %v593_v47 = vld [vmem:[#allocation8 + $0xd0] sm:$0xff]  ;;  %v605_v48 = vmul.f32 %v590_v46, %v587_v45  ;;  %v670_v46 = vld [vmem:[#allocation8 + $0xf8] sm:$0xff] }
 0x107   :  { %v503_v49 = vadd.f32 %v501_v44, %v499_v43 }
 0x108   :  { %v504_v52 = vadd.f32 %v502_v51, %v500_v50  ;;  %v591_v50 = vld [vmem:[#allocation6 + $0xd8] sm:$0xff]  ;;  %v596_v51 = vld [vmem:[#allocation9 + $0xd0] sm:$0xff] }
 0x109   :  { %506 = vst [vmem:[#allocation12 + $0xa0] sm:$0xff] %v503_v49  ;;  %508 = vst [vmem:[#allocation2 + $0x1] sm:$0xff] %v503_v49  ;;  %v535_v4 = vmul.f32 %v520_v59, %v503_v49  ;;  %v588_v49 = vld [vmem:[#allocation3 + $0xd8] sm:$0xff] }
 0x10a   :  { %507 = vst [vmem:[#allocation12 + $0xa8] sm:$0xff] %v504_v52  ;;  %509 = vst [vmem:[#allocation2 + $0x9] sm:$0xff] %v504_v52  ;;  %v536_v12 = vmul.f32 %v521_v5, %v504_v52 }
 0x110   :  { %v525_v60 = vld [vmem:[#allocation2] sm:$0xff] }
 0x111   :  { %v531_v61 = vmul.f32 %v525_v60, %v517_v55  ;;  %v526_v1 = vld [vmem:[#allocation2 + $0x8] sm:$0xff]  ;;  %v597_v60 = vld [vmem:[#allocation9 + $0xd8] sm:$0xff] }
 0x112   :  { %v527_v2 = vld [vmem:[#allocation2 + $0x2] sm:$0xff]  ;;  %v532_v6 = vmul.f32 %v526_v1, %v518_v62  ;;  %v528_v10 = vld [vmem:[#allocation2 + $0xa] sm:$0xff] }
 0x113   :  { %v533_v3 = vadd.f32 %v531_v61, %v529_v56  ;;  %v539_v8 = vmul.f32 %v527_v2, %v523_v63  ;;  %v540_v15 = vmul.f32 %v528_v10, %v524_v9  ;;  %v599_v55 = vld [vmem:[#allocation11 + $0xd0] sm:$0xff]  ;;  %v606_v56 = vmul.f32 %v591_v50, %v588_v49  ;;  %v600_v1 = vld [vmem:[#allocation11 + $0xd8] sm:$0xff]  ;;  %v625_v9 = vld [vmem:[#allocation3 + $0xe0] sm:$0xff] }
 0x114   :  { %v534_v11 = vadd.f32 %v532_v6, %v530_v0  ;;  %v628_v10 = vld [vmem:[#allocation6 + $0xe0] sm:$0xff] }
 0x115   :  { %v537_v7 = vadd.f32 %v535_v4, %v533_v3 }
 0x116   :  { %v538_v14 = vadd.f32 %v536_v12, %v534_v11  ;;  %v631_v11 = vld [vmem:[#allocation8 + $0xe0] sm:$0xff]  ;;  %v643_v12 = vmul.f32 %v628_v10, %v625_v9 }
 0x117   :  { %v541_v13 = vadd.f32 %v539_v8, %v537_v7 }
 0x118   :  { %v542_v16 = vadd.f32 %v540_v15, %v538_v14  ;;  %v629_v14 = vld [vmem:[#allocation6 + $0xe8] sm:$0xff]  ;;  %v634_v15 = vld [vmem:[#allocation9 + $0xe0] sm:$0xff] }
 0x119   :  { %544 = vst [vmem:[#allocation12 + $0xb0] sm:$0xff] %v541_v13  ;;  %546 = vst [vmem:[#allocation2 + $0x1] sm:$0xff] %v541_v13  ;;  %v573_v31 = vmul.f32 %v558_v23, %v541_v13  ;;  %v626_v13 = vld [vmem:[#allocation3 + $0xe8] sm:$0xff] }
 0x11a   :  { %545 = vst [vmem:[#allocation12 + $0xb8] sm:$0xff] %v542_v16  ;;  %547 = vst [vmem:[#allocation2 + $0x9] sm:$0xff] %v542_v16  ;;  %v574_v40 = vmul.f32 %v559_v32, %v542_v16 }
 0x120   :  { %v563_v24 = vld [vmem:[#allocation2] sm:$0xff] }
 0x121   :  { %v569_v25 = vmul.f32 %v563_v24, %v555_v19  ;;  %v565_v29 = vld [vmem:[#allocation2 + $0x2] sm:$0xff]  ;;  %v566_v38 = vld [vmem:[#allocation2 + $0xa] sm:$0xff]  ;;  %v637_v19 = vld [vmem:[#allocation11 + $0xe0] sm:$0xff] }
 0x122   :  { %v564_v33 = vld [vmem:[#allocation2 + $0x8] sm:$0xff]  ;;  %v577_v36 = vmul.f32 %v565_v29, %v561_v27  ;;  %v578_v43 = vmul.f32 %v566_v38, %v562_v37  ;;  %v635_v24 = vld [vmem:[#allocation9 + $0xe8] sm:$0xff] }
 0x123   :  { %v571_v30 = vadd.f32 %v569_v25, %v567_v20  ;;  %v570_v34 = vmul.f32 %v564_v33, %v556_v26  ;;  %v644_v20 = vmul.f32 %v629_v14, %v626_v13  ;;  %v638_v29 = vld [vmem:[#allocation11 + $0xe8] sm:$0xff]  ;;  %v663_v37 = vld [vmem:[#allocation3 + $0xf0] sm:$0xff] }
 0x124   :  { %v666_v38 = vld [vmem:[#allocation6 + $0xf0] sm:$0xff] }
 0x125   :  { %v575_v35 = vadd.f32 %v573_v31, %v571_v30  ;;  %v572_v39 = vadd.f32 %v570_v34, %v568_v28 }
 0x127   :  { %v579_v41 = vadd.f32 %v577_v36, %v575_v35  ;;  %v576_v42 = vadd.f32 %v574_v40, %v572_v39  ;;  %v669_v39 = vld [vmem:[#allocation8 + $0xf0] sm:$0xff]  ;;  %v681_v40 = vmul.f32 %v666_v38, %v663_v37 }
 0x129   :  { %582 = vst [vmem:[#allocation12 + $0xc0] sm:$0xff] %v579_v41  ;;  %584 = vst [vmem:[#allocation2 + $0x1] sm:$0xff] %v579_v41  ;;  %v580_v44 = vadd.f32 %v578_v43, %v576_v42  ;;  %v611_v59 = vmul.f32 %v596_v51, %v579_v41  ;;  %v664_v41 = vld [vmem:[#allocation3 + $0xf8] sm:$0xff]  ;;  %v672_v43 = vld [vmem:[#allocation9 + $0xf0] sm:$0xff] }
 0x12a   :  { %v667_v42 = vld [vmem:[#allocation6 + $0xf8] sm:$0xff] }
 0x12b   :  { %583 = vst [vmem:[#allocation12 + $0xc8] sm:$0xff] %v580_v44  ;;  %585 = vst [vmem:[#allocation2 + $0x9] sm:$0xff] %v580_v44  ;;  %v612_v4 = vmul.f32 %v597_v60, %v580_v44 }
 0x130   :  { %v601_v52 = vld [vmem:[#allocation2] sm:$0xff] }
 0x131   :  { %v607_v53 = vmul.f32 %v601_v52, %v593_v47  ;;  %v675_v47 = vld [vmem:[#allocation11 + $0xf0] sm:$0xff]  ;;  %v673_v52 = vld [vmem:[#allocation9 + $0xf8] sm:$0xff] }
 0x132   :  { %v603_v57 = vld [vmem:[#allocation2 + $0x2] sm:$0xff]  ;;  %v604_v2 = vld [vmem:[#allocation2 + $0xa] sm:$0xff] }
 0x133   :  { %v609_v58 = vadd.f32 %v607_v53, %v605_v48  ;;  %v602_v61 = vld [vmem:[#allocation2 + $0x8] sm:$0xff]  ;;  %v615_v0 = vmul.f32 %v603_v57, %v599_v55  ;;  %v616_v7 = vmul.f32 %v604_v2, %v600_v1  ;;  %v682_v48 = vmul.f32 %v667_v42, %v664_v41  ;;  %v676_v57 = vld [vmem:[#allocation11 + $0xf8] sm:$0xff] }
 0x134   :  { %v608_v62 = vmul.f32 %v602_v61, %v594_v54 }
 0x135   :  { %v613_v63 = vadd.f32 %v611_v59, %v609_v58 }
 0x136   :  { %v610_v3 = vadd.f32 %v608_v62, %v606_v56 }
 0x137   :  { %v617_v5 = vadd.f32 %v615_v0, %v613_v63 }
 0x138   :  { %v614_v6 = vadd.f32 %v612_v4, %v610_v3 }
 0x139   :  { %620 = vst [vmem:[#allocation12 + $0xd0] sm:$0xff] %v617_v5  ;;  %622 = vst [vmem:[#allocation2 + $0x1] sm:$0xff] %v617_v5  ;;  %v649_v23 = vmul.f32 %v634_v15, %v617_v5 }
 0x13a   :  { %v618_v8 = vadd.f32 %v616_v7, %v614_v6 }
 0x13c   :  { %621 = vst [vmem:[#allocation12 + $0xd8] sm:$0xff] %v618_v8  ;;  %623 = vst [vmem:[#allocation2 + $0x9] sm:$0xff] %v618_v8  ;;  %v650_v32 = vmul.f32 %v635_v24, %v618_v8 }
 0x140   :  { %v639_v16 = vld [vmem:[#allocation2] sm:$0xff] }
 0x141   :  { %v645_v17 = vmul.f32 %v639_v16, %v631_v11 }
 0x143   :  { %v641_v21 = vld [vmem:[#allocation2 + $0x2] sm:$0xff]  ;;  %v647_v22 = vadd.f32 %v645_v17, %v643_v12  ;;  %v642_v30 = vld [vmem:[#allocation2 + $0xa] sm:$0xff] }
 0x144   :  { %v640_v25 = vld [vmem:[#allocation2 + $0x8] sm:$0xff]  ;;  %v653_v28 = vmul.f32 %v641_v21, %v637_v19  ;;  %v654_v35 = vmul.f32 %v642_v30, %v638_v29 }
 0x145   :  { %v646_v26 = vmul.f32 %v640_v25, %v632_v18  ;;  %v651_v27 = vadd.f32 %v649_v23, %v647_v22 }
 0x147   :  { %v648_v31 = vadd.f32 %v646_v26, %v644_v20  ;;  %v655_v33 = vadd.f32 %v653_v28, %v651_v27 }
 0x149   :  { %v652_v34 = vadd.f32 %v650_v32, %v648_v31  ;;  %658 = vst [vmem:[#allocation12 + $0xe0] sm:$0xff] %v655_v33  ;;  %660 = vst [vmem:[#allocation2 + $0x1] sm:$0xff] %v655_v33  ;;  %v687_v51 = vmul.f32 %v672_v43, %v655_v33 }
 0x14b   :  { %v656_v36 = vadd.f32 %v654_v35, %v652_v34 }
 0x14d   :  { %659 = vst [vmem:[#allocation12 + $0xe8] sm:$0xff] %v656_v36  ;;  %661 = vst [vmem:[#allocation2 + $0x9] sm:$0xff] %v656_v36  ;;  %v688_v60 = vmul.f32 %v673_v52, %v656_v36 }
 0x150   :  { %v677_v44 = vld [vmem:[#allocation2] sm:$0xff] }
 0x151   :  { %v683_v45 = vmul.f32 %v677_v44, %v669_v39 }
 0x153   :  { %v685_v50 = vadd.f32 %v683_v45, %v681_v40 }
 0x154   :  { %v679_v49 = vld [vmem:[#allocation2 + $0x2] sm:$0xff]  ;;  %v680_v58 = vld [vmem:[#allocation2 + $0xa] sm:$0xff] }
 0x155   :  { %v678_v53 = vld [vmem:[#allocation2 + $0x8] sm:$0xff]  ;;  %v689_v55 = vadd.f32 %v687_v51, %v685_v50  ;;  %v691_v56 = vmul.f32 %v679_v49, %v675_v47  ;;  %v692_v63 = vmul.f32 %v680_v58, %v676_v57 }
 0x156   :  { %v684_v54 = vmul.f32 %v678_v53, %v670_v46 }
 0x157   :  { %v693_v61 = vadd.f32 %v691_v56, %v689_v55 }
 0x158   :  { %v686_v59 = vadd.f32 %v684_v54, %v682_v48 }
 0x159   :  { %696 = vst [vmem:[#allocation12 + $0xf0] sm:$0xff] %v693_v61  ;;  %698 = vst [vmem:[#allocation2 + $0x1] sm:$0xff] %v693_v61 }
 0x15a   :  { %v690_v62 = vadd.f32 %v688_v60, %v686_v59 }
 0x15c   :  { %v694_v0 = vadd.f32 %v692_v63, %v690_v62 }
 0x15e   :  { %697 = vst [vmem:[#allocation12 + $0xf8] sm:$0xff] %v694_v0  ;;  %699 = vst [vmem:[#allocation2 + $0x9] sm:$0xff] %v694_v0 }
 0x15f   :  { %849 = shalt.err (!%p846_p2)
}
 0x160   :  { %s850_s7 = scalar_lea.hbm %s1016_s5, 4096 }
 0x161   :  { %p851_p3 = scmp.ne.s32.totalorder %s1016_s5, %s850_s7  ;;  %p854_p4 = scmp.lt.u32.totalorder %s850_s7, %s1016_s5 }
 0x163   :  { %p856_p5 = pnand %p854_p4, %p851_p3 }
 0x165   :  { %859 = shalt.err (!%p856_p5)
}
 0x166   :  { %711 = dma.vmem_to_hbm [thread:$0]  %s706_s28, 4096, %s1016_s5, [#allocation5], %s870_s30, %s870_s30, %s871_s6  }
 0x167   :  { %866 = dma.done.wait [#allocation5], 4096  }
 0x168   :  { %867 = vsyncadd [#allocation5], 4294963200 }
 0x169   :  { %715 = vsyncpa [#allocation4], 1 }
 0x16a   :  { %716 = vsyncpa [#allocation7], 1 }
 0x16b   :  { %717 = vsyncpa [#allocation10], 1 }
 0x16c   :  { %718 = vsyncpa [#allocation5], 1 }

</bundles_post_ra>
